<compile_context>
chip_gen: v7x
topology: tpu7x:2x2x1
jax: 0.10.0
libtpu: 0.0.40
codegen_flags: <defaults>
</compile_context>

<pallas_src>
import numpy as np
import jax
import jax.numpy as jnp
from jax.experimental import pallas as pl
from jax.experimental.pallas import tpu as pltpu

RNN_HIDDEN = 128  # hard-coded as mlp_hidden_size['rnn'] in the PyTorch module


# ----------------------------- Pallas kernel ------------------------------- #

def traj_fused_kernel(x_ref, wih_ref, whh_ref, bih_ref, bhh_ref,
                      wk_ref, bout_ref, out_ref, xn_scr, g_scr):
    """Fused normalize + GRU + (Conv1d∘Linear) + Softplus.

    x_ref:    (T, B, D)  time-major input (wrapper transposes the batch_first x)
    wih_ref:  (D, 3H)    transposed GRU weight_ih_l0, gate order (r, z, n)
    whh_ref:  (H, 3H)    transposed GRU weight_hh_l0
    bih_ref:  (1, 3H)
    bhh_ref:  (1, 3H)
    wk_ref:   (K, H, P)  fused conv+linear weight per tap
    bout_ref: (1, P)     fused conv+linear bias
    out_ref:  (L*B, P)   row l*B + b == output[l, b, :],  L = T - K + 1
    xn_scr:   VMEM (T*B, D) scratch  (normalized input, time-major flattened)
    g_scr:    VMEM (T*B, H) scratch  (GRU hidden states, time-major flattened)
    """
    T, B, D = x_ref.shape
    H = whh_ref.shape[0]
    K = wk_ref.shape[0]
    P = wk_ref.shape[2]
    L = T - K + 1

    # ---- F.normalize(p=2, dim=1, eps=1e-12): L2 norm over time per (b, d) ----
    x = x_ref[...]                                                  # (T, B, D)
    denom = jnp.maximum(jnp.sqrt(jnp.sum(x * x, axis=0)), 1e-12)    # (B, D)
    x = x / denom                                                   # bcast over T

    # ---- batched input-side GRU matmul (off the serial recurrence path) ----
    # Flatten time-major into scratch so a single MXU matmul covers all steps.
    for t in range(T):                       # small static trip count
        xn_scr[t * B:(t + 1) * B, :] = x[t]
    gi_all = jnp.dot(xn_scr[...], wih_ref[...],
                     preferred_element_type=jnp.float32) + bih_ref[...]  # (T*B, 3H)

    # ---- GRU recurrence: only h @ Whh remains serial ----
    whh = whh_ref[...]
    bhh = bhh_ref[...]
    h = jnp.zeros((B, H), jnp.float32)
    # T is small here; for large T switch to lax.fori_loop(..., unroll=True)
    # to bound vreg live ranges.
    for t in range(T):
        gi = gi_all[t * B:(t + 1) * B, :]
        gh = jnp.dot(h, whh, preferred_element_type=jnp.float32) + bhh
        r = jax.nn.sigmoid(gi[:, :H] + gh[:, :H])
        z = jax.nn.sigmoid(gi[:, H:2 * H] + gh[:, H:2 * H])
        n = jnp.tanh(gi[:, 2 * H:] + r * gh[:, 2 * H:])
        h = (1.0 - z) * n + z * h
        g_scr[t * B:(t + 1) * B, :] = h

    # ---- fused Conv1d + Linear + Softplus ----
    # y[l, b, :] = sum_k g[b, l+k, :] @ Wk'[k] + b'
    g_flat = g_scr[...]                                             # (T*B, H)
    acc = jnp.broadcast_to(bout_ref[...], (L * B, P))               # hoisted bias
    for k in range(K):                       # K matmuls with M = T*B
        zk = jnp.dot(g_flat, wk_ref[k], preferred_element_type=jnp.float32)
        acc = acc + zk[k * B:k * B + L * B, :]                      # shift-add
    # torch.nn.Softplus(beta=1, threshold=20)
    out_ref[...] = jnp.where(acc > 20.0, acc,
                             jnp.log1p(jnp.exp(jnp.minimum(acc, 20.0))))


# ------------------------------ Host wrapper -------------------------------- #

def _vmem_spec():
    return pl.BlockSpec(memory_space=pltpu.MemorySpace.VMEM)


@jax.jit
def traj_model_conv_forward(x, params):
    """x: (B, T, D) float32 (batch_first, like the PyTorch module).

    Returns torch.squeeze of the (L, B, P) predictions, L = T - K + 1.
    """
    B, T, D = x.shape
    H = RNN_HIDDEN

    # Layout plumbing only: present the input time-major to the kernel.
    x_tbd = jnp.transpose(x, (1, 0, 2))          # (T, B, D)

    wih_t = params["w_ih"].T                     # (D, 3H)
    whh_t = params["w_hh"].T                     # (H, 3H)
    bih = params["b_ih"][None, :]                # (1, 3H)
    bhh = params["b_hh"][None, :]                # (1, 3H)

    w_conv = params["w_conv"]                    # (C_out, C_in, K) torch layout
    w_mlp = params["w_mlp"]                      # (P, H)
    K = w_conv.shape[2]
    P = w_mlp.shape[0]
    L = T - K + 1

    # Conv1d followed by Linear is a composition of linear maps -> fold exactly:
    #   Wk'[k, ci, p] = sum_co w_conv[co, ci, k] * w_mlp[p, co]
    #   b'[p]         = sum_co b_conv[co] * w_mlp[p, co] + b_mlp[p]
    wk_fused = jnp.einsum('oik,po->kip', w_conv, w_mlp)              # (K, H, P)
    b_fused = (params["b_conv"] @ w_mlp.T + params["b_mlp"])[None, :]  # (1, P)

    out_flat = pl.pallas_call(
        traj_fused_kernel,
        out_shape=jax.ShapeDtypeStruct((L * B, P), jnp.float32),
        in_specs=[_vmem_spec() for _ in range(7)],
        out_specs=_vmem_spec(),
        scratch_shapes=[pltpu.VMEM((T * B, D), jnp.float32),
                        pltpu.VMEM((T * B, H), jnp.float32)],
    )(x_tbd, wih_t, whh_t, bih, bhh, wk_fused, b_fused)

    # (L*B, P) -> (L, B, P) is exactly permute(2,0,1) + Linear output layout.
    return jnp.squeeze(out_flat.reshape(L, B, P))    # torch.squeeze


def init_params(key, imputed_size, predict_seq, predict_year):
    """Deterministic parameter init mirroring the PyTorch module's shapes."""
    D = imputed_size
    H = RNN_HIDDEN
    P = predict_seq if predict_year == 0 else 1
    ks = jax.random.split(key, 8)
    u = lambda k, shape, lo, hi: jax.random.uniform(k, shape, jnp.float32, lo, hi)

    # GRU params: nn.init.uniform_(param, -0.1, 0.1)
    w_ih = u(ks[0], (3 * H, D), -0.1, 0.1)
    w_hh = u(ks[1], (3 * H, H), -0.1, 0.1)
    b_ih = u(ks[2], (3 * H,), -0.1, 0.1)
    b_hh = u(ks[3], (3 * H,), -0.1, 0.1)

    # Conv1d(D, D, K) default init: uniform(-1/sqrt(fan_in), 1/sqrt(fan_in))
    K = predict_seq
    bc = 1.0 / np.sqrt(D * K)
    w_conv = u(ks[4], (D, D, K), -bc, bc)
    b_conv = u(ks[5], (D,), -bc, bc)

    # Linear(H, P): xavier_uniform weight, default-init bias
    lim = np.sqrt(6.0 / (H + P))
    w_mlp = u(ks[6], (P, H), -lim, lim)
    bm = 1.0 / np.sqrt(H)
    b_mlp = u(ks[7], (P,), -bm, bm)

    return {"w_ih": w_ih, "w_hh": w_hh, "b_ih": b_ih, "b_hh": b_hh,
            "w_conv": w_conv, "b_conv": b_conv,
            "w_mlp": w_mlp, "b_mlp": b_mlp}


if __name__ == "__main__":
    # Small shapes consistent with the module: imputed_size must equal the
    # hard-coded GRU hidden (128) for the Conv1d to be channel-compatible.
    imputed_size = 128
    predict_seq = 4
    predict_year = 0
    batch = 2
    seq_len = 8

    key = jax.random.PRNGKey(0)
    k_x, k_p = jax.random.split(key)
    x = jax.random.normal(k_x, (batch, seq_len, imputed_size), jnp.float32)
    params = init_params(k_p, imputed_size, predict_seq, predict_year)

    pred = traj_model_conv_forward(x, params)
    jax.block_until_ready(pred)

    expected_L = seq_len - predict_seq + 1
    assert pred.shape == (expected_L, batch, predict_seq), pred.shape
    assert bool(jnp.all(pred >= 0.0))  # Softplus output is non-negative
    assert bool(jnp.all(jnp.isfinite(pred)))
    print("KERNEL_OK")
</pallas_src>

<mosaic_0001>
module attributes {stable_mosaic.version = 11 : i64} {
  func.func @traj_fused_kernel(%arg0: memref<8x2x128xf32, #tpu.memory_space<vmem>>, %arg1: memref<128x384xf32, #tpu.memory_space<vmem>>, %arg2: memref<128x384xf32, #tpu.memory_space<vmem>>, %arg3: memref<1x384xf32, #tpu.memory_space<vmem>>, %arg4: memref<1x384xf32, #tpu.memory_space<vmem>>, %arg5: memref<4x128x4xf32, #tpu.memory_space<vmem>>, %arg6: memref<1x4xf32, #tpu.memory_space<vmem>>, %arg7: memref<10x4xf32, #tpu.memory_space<vmem>>, %arg8: memref<16x128xf32, #tpu.memory_space<vmem>>, %arg9: memref<16x128xf32, #tpu.memory_space<vmem>>) attributes {dimension_semantics = [], scalar_prefetch = 0 : i64, scratch_operands = 2 : i64, tpu.core_type = #tpu.core_type<tc>} {
    %c0 = arith.constant 0 : index
    %c0_0 = arith.constant 0 : index
    %c0_1 = arith.constant 0 : index
    %0 = vector.load %arg0[%c0, %c0_0, %c0_1] : memref<8x2x128xf32, #tpu.memory_space<vmem>>, vector<8x2x128xf32>
    %1 = arith.mulf %0, %0 : vector<8x2x128xf32>
    %cst = arith.constant dense<0.000000e+00> : vector<2x128xf32>
    %2 = vector.multi_reduction <add>, %1, %cst [0] : vector<8x2x128xf32> to vector<2x128xf32>
    %3 = math.sqrt %2 : vector<2x128xf32>
    %cst_2 = arith.constant 9.99999996E-13 : f32
    %4 = vector.broadcast %cst_2 : f32 to vector<2x128xf32>
    %5 = arith.maximumf %3, %4 : vector<2x128xf32>
    %6 = vector.shape_cast %5 : vector<2x128xf32> to vector<1x2x128xf32>
    %7 = vector.broadcast %6 : vector<1x2x128xf32> to vector<8x2x128xf32>
    %8 = arith.divf %0, %7 : vector<8x2x128xf32>
    %9 = vector.extract_strided_slice %8 {offsets = [0, 0, 0], sizes = [1, 2, 128], strides = [1, 1, 1]} : vector<8x2x128xf32> to vector<1x2x128xf32>
    %10 = vector.shape_cast %9 : vector<1x2x128xf32> to vector<2x128xf32>
    %c0_3 = arith.constant 0 : index
    %c0_4 = arith.constant 0 : index
    %11 = vector.load %arg8[%c0_3, %c0_4] : memref<16x128xf32, #tpu.memory_space<vmem>>, vector<2x128xf32>
    tpu.vector_store %arg8[%c0_3, %c0_4], %10 {strides = array<i32>} : memref<16x128xf32, #tpu.memory_space<vmem>>, vector<2x128xf32>,
    %12 = vector.extract_strided_slice %8 {offsets = [1, 0, 0], sizes = [1, 2, 128], strides = [1, 1, 1]} : vector<8x2x128xf32> to vector<1x2x128xf32>
    %13 = vector.shape_cast %12 : vector<1x2x128xf32> to vector<2x128xf32>
    %c2 = arith.constant 2 : index
    %c0_5 = arith.constant 0 : index
    %14 = vector.load %arg8[%c2, %c0_5] : memref<16x128xf32, #tpu.memory_space<vmem>>, vector<2x128xf32>
    tpu.vector_store %arg8[%c2, %c0_5], %13 {strides = array<i32>} : memref<16x128xf32, #tpu.memory_space<vmem>>, vector<2x128xf32>,
    %15 = vector.extract_strided_slice %8 {offsets = [2, 0, 0], sizes = [1, 2, 128], strides = [1, 1, 1]} : vector<8x2x128xf32> to vector<1x2x128xf32>
    %16 = vector.shape_cast %15 : vector<1x2x128xf32> to vector<2x128xf32>
    %c4 = arith.constant 4 : index
    %c0_6 = arith.constant 0 : index
    %17 = vector.load %arg8[%c4, %c0_6] : memref<16x128xf32, #tpu.memory_space<vmem>>, vector<2x128xf32>
    tpu.vector_store %arg8[%c4, %c0_6], %16 {strides = array<i32>} : memref<16x128xf32, #tpu.memory_space<vmem>>, vector<2x128xf32>,
    %18 = vector.extract_strided_slice %8 {offsets = [3, 0, 0], sizes = [1, 2, 128], strides = [1, 1, 1]} : vector<8x2x128xf32> to vector<1x2x128xf32>
    %19 = vector.shape_cast %18 : vector<1x2x128xf32> to vector<2x128xf32>
    %c6 = arith.constant 6 : index
    %c0_7 = arith.constant 0 : index
    %20 = vector.load %arg8[%c6, %c0_7] : memref<16x128xf32, #tpu.memory_space<vmem>>, vector<2x128xf32>
    tpu.vector_store %arg8[%c6, %c0_7], %19 {strides = array<i32>} : memref<16x128xf32, #tpu.memory_space<vmem>>, vector<2x128xf32>,
    %21 = vector.extract_strided_slice %8 {offsets = [4, 0, 0], sizes = [1, 2, 128], strides = [1, 1, 1]} : vector<8x2x128xf32> to vector<1x2x128xf32>
    %22 = vector.shape_cast %21 : vector<1x2x128xf32> to vector<2x128xf32>
    %c8 = arith.constant 8 : index
    %c0_8 = arith.constant 0 : index
    %23 = vector.load %arg8[%c8, %c0_8] : memref<16x128xf32, #tpu.memory_space<vmem>>, vector<2x128xf32>
    tpu.vector_store %arg8[%c8, %c0_8], %22 {strides = array<i32>} : memref<16x128xf32, #tpu.memory_space<vmem>>, vector<2x128xf32>,
    %24 = vector.extract_strided_slice %8 {offsets = [5, 0, 0], sizes = [1, 2, 128], strides = [1, 1, 1]} : vector<8x2x128xf32> to vector<1x2x128xf32>
    %25 = vector.shape_cast %24 : vector<1x2x128xf32> to vector<2x128xf32>
    %c10 = arith.constant 10 : index
    %c0_9 = arith.constant 0 : index
    %26 = vector.load %arg8[%c10, %c0_9] : memref<16x128xf32, #tpu.memory_space<vmem>>, vector<2x128xf32>
    tpu.vector_store %arg8[%c10, %c0_9], %25 {strides = array<i32>} : memref<16x128xf32, #tpu.memory_space<vmem>>, vector<2x128xf32>,
    %27 = vector.extract_strided_slice %8 {offsets = [6, 0, 0], sizes = [1, 2, 128], strides = [1, 1, 1]} : vector<8x2x128xf32> to vector<1x2x128xf32>
    %28 = vector.shape_cast %27 : vector<1x2x128xf32> to vector<2x128xf32>
    %c12 = arith.constant 12 : index
    %c0_10 = arith.constant 0 : index
    %29 = vector.load %arg8[%c12, %c0_10] : memref<16x128xf32, #tpu.memory_space<vmem>>, vector<2x128xf32>
    tpu.vector_store %arg8[%c12, %c0_10], %28 {strides = array<i32>} : memref<16x128xf32, #tpu.memory_space<vmem>>, vector<2x128xf32>,
    %30 = vector.extract_strided_slice %8 {offsets = [7, 0, 0], sizes = [1, 2, 128], strides = [1, 1, 1]} : vector<8x2x128xf32> to vector<1x2x128xf32>
    %31 = vector.shape_cast %30 : vector<1x2x128xf32> to vector<2x128xf32>
    %c14 = arith.constant 14 : index
    %c0_11 = arith.constant 0 : index
    %32 = vector.load %arg8[%c14, %c0_11] : memref<16x128xf32, #tpu.memory_space<vmem>>, vector<2x128xf32>
    tpu.vector_store %arg8[%c14, %c0_11], %31 {strides = array<i32>} : memref<16x128xf32, #tpu.memory_space<vmem>>, vector<2x128xf32>,
    %c0_12 = arith.constant 0 : index
    %c0_13 = arith.constant 0 : index
    %33 = vector.load %arg8[%c0_12, %c0_13] : memref<16x128xf32, #tpu.memory_space<vmem>>, vector<16x128xf32>
    %c0_14 = arith.constant 0 : index
    %c0_15 = arith.constant 0 : index
    %34 = vector.load %arg1[%c0_14, %c0_15] : memref<128x384xf32, #tpu.memory_space<vmem>>, vector<128x384xf32>
    %cst_16 = arith.constant dense<0.000000e+00> : vector<16x384xf32>
    %35 = tpu.matmul %33, %34, %cst_16 {dimension_numbers = #tpu.dot_dimension_numbers<[1], [0], [0], [1], [0, 0, 1, 1], [], []>} : vector<16x128xf32>, vector<128x384xf32>, vector<16x384xf32> -> vector<16x384xf32>
    %c0_17 = arith.constant 0 : index
    %c0_18 = arith.constant 0 : index
    %36 = vector.load %arg3[%c0_17, %c0_18] : memref<1x384xf32, #tpu.memory_space<vmem>>, vector<1x384xf32>
    %37 = vector.broadcast %36 : vector<1x384xf32> to vector<16x384xf32>
    %38 = arith.addf %35, %37 : vector<16x384xf32>
    %c0_19 = arith.constant 0 : index
    %c0_20 = arith.constant 0 : index
    %39 = vector.load %arg2[%c0_19, %c0_20] : memref<128x384xf32, #tpu.memory_space<vmem>>, vector<128x384xf32>
    %c0_21 = arith.constant 0 : index
    %c0_22 = arith.constant 0 : index
    %40 = vector.load %arg4[%c0_21, %c0_22] : memref<1x384xf32, #tpu.memory_space<vmem>>, vector<1x384xf32>
    %cst_23 = arith.constant 0.000000e+00 : f32
    %41 = vector.broadcast %cst_23 : f32 to vector<2x128xf32>
    %42 = vector.extract_strided_slice %38 {offsets = [0, 0], sizes = [2, 384], strides = [1, 1]} : vector<16x384xf32> to vector<2x384xf32>
    %cst_24 = arith.constant dense<0.000000e+00> : vector<2x384xf32>
    %43 = tpu.matmul %41, %39, %cst_24 {dimension_numbers = #tpu.dot_dimension_numbers<[1], [0], [0], [1], [0, 0, 1, 1], [], []>} : vector<2x128xf32>, vector<128x384xf32>, vector<2x384xf32> -> vector<2x384xf32>
    %44 = vector.broadcast %40 : vector<1x384xf32> to vector<2x384xf32>
    %45 = arith.addf %43, %44 : vector<2x384xf32>
    %46 = vector.extract_strided_slice %42 {offsets = [0, 0], sizes = [2, 128], strides = [1, 1]} : vector<2x384xf32> to vector<2x128xf32>
    %47 = vector.extract_strided_slice %45 {offsets = [0, 0], sizes = [2, 128], strides = [1, 1]} : vector<2x384xf32> to vector<2x128xf32>
    %48 = arith.addf %46, %47 : vector<2x128xf32>
    %49 = arith.negf %48 : vector<2x128xf32>
    %50 = math.exp %49 : vector<2x128xf32>
    %cst_25 = arith.constant 1.000000e+00 : f32
    %51 = vector.broadcast %cst_25 : f32 to vector<2x128xf32>
    %52 = arith.addf %51, %50 : vector<2x128xf32>
    %53 = arith.divf %51, %52 : vector<2x128xf32>
    %54 = vector.extract_strided_slice %42 {offsets = [0, 128], sizes = [2, 128], strides = [1, 1]} : vector<2x384xf32> to vector<2x128xf32>
    %55 = vector.extract_strided_slice %45 {offsets = [0, 128], sizes = [2, 128], strides = [1, 1]} : vector<2x384xf32> to vector<2x128xf32>
    %56 = arith.addf %54, %55 : vector<2x128xf32>
    %57 = arith.negf %56 : vector<2x128xf32>
    %58 = math.exp %57 : vector<2x128xf32>
    %cst_26 = arith.constant 1.000000e+00 : f32
    %59 = vector.broadcast %cst_26 : f32 to vector<2x128xf32>
    %60 = arith.addf %59, %58 : vector<2x128xf32>
    %61 = arith.divf %59, %60 : vector<2x128xf32>
    %62 = vector.extract_strided_slice %42 {offsets = [0, 256], sizes = [2, 128], strides = [1, 1]} : vector<2x384xf32> to vector<2x128xf32>
    %63 = vector.extract_strided_slice %45 {offsets = [0, 256], sizes = [2, 128], strides = [1, 1]} : vector<2x384xf32> to vector<2x128xf32>
    %64 = arith.mulf %53, %63 : vector<2x128xf32>
    %65 = arith.addf %62, %64 : vector<2x128xf32>
    %66 = math.tanh %65 : vector<2x128xf32>
    %cst_27 = arith.constant 1.000000e+00 : f32
    %67 = vector.broadcast %cst_27 : f32 to vector<2x128xf32>
    %68 = arith.subf %67, %61 : vector<2x128xf32>
    %69 = arith.mulf %68, %66 : vector<2x128xf32>
    %70 = arith.mulf %61, %41 : vector<2x128xf32>
    %71 = arith.addf %69, %70 : vector<2x128xf32>
    %c0_28 = arith.constant 0 : index
    %c0_29 = arith.constant 0 : index
    %72 = vector.load %arg9[%c0_28, %c0_29] : memref<16x128xf32, #tpu.memory_space<vmem>>, vector<2x128xf32>
    tpu.vector_store %arg9[%c0_28, %c0_29], %71 {strides = array<i32>} : memref<16x128xf32, #tpu.memory_space<vmem>>, vector<2x128xf32>,
    %73 = vector.extract_strided_slice %38 {offsets = [2, 0], sizes = [2, 384], strides = [1, 1]} : vector<16x384xf32> to vector<2x384xf32>
    %cst_30 = arith.constant dense<0.000000e+00> : vector<2x384xf32>
    %74 = tpu.matmul %71, %39, %cst_30 {dimension_numbers = #tpu.dot_dimension_numbers<[1], [0], [0], [1], [0, 0, 1, 1], [], []>} : vector<2x128xf32>, vector<128x384xf32>, vector<2x384xf32> -> vector<2x384xf32>
    %75 = vector.broadcast %40 : vector<1x384xf32> to vector<2x384xf32>
    %76 = arith.addf %74, %75 : vector<2x384xf32>
    %77 = vector.extract_strided_slice %73 {offsets = [0, 0], sizes = [2, 128], strides = [1, 1]} : vector<2x384xf32> to vector<2x128xf32>
    %78 = vector.extract_strided_slice %76 {offsets = [0, 0], sizes = [2, 128], strides = [1, 1]} : vector<2x384xf32> to vector<2x128xf32>
    %79 = arith.addf %77, %78 : vector<2x128xf32>
    %80 = arith.negf %79 : vector<2x128xf32>
    %81 = math.exp %80 : vector<2x128xf32>
    %cst_31 = arith.constant 1.000000e+00 : f32
    %82 = vector.broadcast %cst_31 : f32 to vector<2x128xf32>
    %83 = arith.addf %82, %81 : vector<2x128xf32>
    %84 = arith.divf %82, %83 : vector<2x128xf32>
    %85 = vector.extract_strided_slice %73 {offsets = [0, 128], sizes = [2, 128], strides = [1, 1]} : vector<2x384xf32> to vector<2x128xf32>
    %86 = vector.extract_strided_slice %76 {offsets = [0, 128], sizes = [2, 128], strides = [1, 1]} : vector<2x384xf32> to vector<2x128xf32>
    %87 = arith.addf %85, %86 : vector<2x128xf32>
    %88 = arith.negf %87 : vector<2x128xf32>
    %89 = math.exp %88 : vector<2x128xf32>
    %cst_32 = arith.constant 1.000000e+00 : f32
    %90 = vector.broadcast %cst_32 : f32 to vector<2x128xf32>
    %91 = arith.addf %90, %89 : vector<2x128xf32>
    %92 = arith.divf %90, %91 : vector<2x128xf32>
    %93 = vector.extract_strided_slice %73 {offsets = [0, 256], sizes = [2, 128], strides = [1, 1]} : vector<2x384xf32> to vector<2x128xf32>
    %94 = vector.extract_strided_slice %76 {offsets = [0, 256], sizes = [2, 128], strides = [1, 1]} : vector<2x384xf32> to vector<2x128xf32>
    %95 = arith.mulf %84, %94 : vector<2x128xf32>
    %96 = arith.addf %93, %95 : vector<2x128xf32>
    %97 = math.tanh %96 : vector<2x128xf32>
    %cst_33 = arith.constant 1.000000e+00 : f32
    %98 = vector.broadcast %cst_33 : f32 to vector<2x128xf32>
    %99 = arith.subf %98, %92 : vector<2x128xf32>
    %100 = arith.mulf %99, %97 : vector<2x128xf32>
    %101 = arith.mulf %92, %71 : vector<2x128xf32>
    %102 = arith.addf %100, %101 : vector<2x128xf32>
    %c2_34 = arith.constant 2 : index
    %c0_35 = arith.constant 0 : index
    %103 = vector.load %arg9[%c2_34, %c0_35] : memref<16x128xf32, #tpu.memory_space<vmem>>, vector<2x128xf32>
    tpu.vector_store %arg9[%c2_34, %c0_35], %102 {strides = array<i32>} : memref<16x128xf32, #tpu.memory_space<vmem>>, vector<2x128xf32>,
    %104 = vector.extract_strided_slice %38 {offsets = [4, 0], sizes = [2, 384], strides = [1, 1]} : vector<16x384xf32> to vector<2x384xf32>
    %cst_36 = arith.constant dense<0.000000e+00> : vector<2x384xf32>
    %105 = tpu.matmul %102, %39, %cst_36 {dimension_numbers = #tpu.dot_dimension_numbers<[1], [0], [0], [1], [0, 0, 1, 1], [], []>} : vector<2x128xf32>, vector<128x384xf32>, vector<2x384xf32> -> vector<2x384xf32>
    %106 = vector.broadcast %40 : vector<1x384xf32> to vector<2x384xf32>
    %107 = arith.addf %105, %106 : vector<2x384xf32>
    %108 = vector.extract_strided_slice %104 {offsets = [0, 0], sizes = [2, 128], strides = [1, 1]} : vector<2x384xf32> to vector<2x128xf32>
    %109 = vector.extract_strided_slice %107 {offsets = [0, 0], sizes = [2, 128], strides = [1, 1]} : vector<2x384xf32> to vector<2x128xf32>
    %110 = arith.addf %108, %109 : vector<2x128xf32>
    %111 = arith.negf %110 : vector<2x128xf32>
    %112 = math.exp %111 : vector<2x128xf32>
    %cst_37 = arith.constant 1.000000e+00 : f32
    %113 = vector.broadcast %cst_37 : f32 to vector<2x128xf32>
    %114 = arith.addf %113, %112 : vector<2x128xf32>
    %115 = arith.divf %113, %114 : vector<2x128xf32>
    %116 = vector.extract_strided_slice %104 {offsets = [0, 128], sizes = [2, 128], strides = [1, 1]} : vector<2x384xf32> to vector<2x128xf32>
    %117 = vector.extract_strided_slice %107 {offsets = [0, 128], sizes = [2, 128], strides = [1, 1]} : vector<2x384xf32> to vector<2x128xf32>
    %118 = arith.addf %116, %117 : vector<2x128xf32>
    %119 = arith.negf %118 : vector<2x128xf32>
    %120 = math.exp %119 : vector<2x128xf32>
    %cst_38 = arith.constant 1.000000e+00 : f32
    %121 = vector.broadcast %cst_38 : f32 to vector<2x128xf32>
    %122 = arith.addf %121, %120 : vector<2x128xf32>
    %123 = arith.divf %121, %122 : vector<2x128xf32>
    %124 = vector.extract_strided_slice %104 {offsets = [0, 256], sizes = [2, 128], strides = [1, 1]} : vector<2x384xf32> to vector<2x128xf32>
    %125 = vector.extract_strided_slice %107 {offsets = [0, 256], sizes = [2, 128], strides = [1, 1]} : vector<2x384xf32> to vector<2x128xf32>
    %126 = arith.mulf %115, %125 : vector<2x128xf32>
    %127 = arith.addf %124, %126 : vector<2x128xf32>
    %128 = math.tanh %127 : vector<2x128xf32>
    %cst_39 = arith.constant 1.000000e+00 : f32
    %129 = vector.broadcast %cst_39 : f32 to vector<2x128xf32>
    %130 = arith.subf %129, %123 : vector<2x128xf32>
    %131 = arith.mulf %130, %128 : vector<2x128xf32>
    %132 = arith.mulf %123, %102 : vector<2x128xf32>
    %133 = arith.addf %131, %132 : vector<2x128xf32>
    %c4_40 = arith.constant 4 : index
    %c0_41 = arith.constant 0 : index
    %134 = vector.load %arg9[%c4_40, %c0_41] : memref<16x128xf32, #tpu.memory_space<vmem>>, vector<2x128xf32>
    tpu.vector_store %arg9[%c4_40, %c0_41], %133 {strides = array<i32>} : memref<16x128xf32, #tpu.memory_space<vmem>>, vector<2x128xf32>,
    %135 = vector.extract_strided_slice %38 {offsets = [6, 0], sizes = [2, 384], strides = [1, 1]} : vector<16x384xf32> to vector<2x384xf32>
    %cst_42 = arith.constant dense<0.000000e+00> : vector<2x384xf32>
    %136 = tpu.matmul %133, %39, %cst_42 {dimension_numbers = #tpu.dot_dimension_numbers<[1], [0], [0], [1], [0, 0, 1, 1], [], []>} : vector<2x128xf32>, vector<128x384xf32>, vector<2x384xf32> -> vector<2x384xf32>
    %137 = vector.broadcast %40 : vector<1x384xf32> to vector<2x384xf32>
    %138 = arith.addf %136, %137 : vector<2x384xf32>
    %139 = vector.extract_strided_slice %135 {offsets = [0, 0], sizes = [2, 128], strides = [1, 1]} : vector<2x384xf32> to vector<2x128xf32>
    %140 = vector.extract_strided_slice %138 {offsets = [0, 0], sizes = [2, 128], strides = [1, 1]} : vector<2x384xf32> to vector<2x128xf32>
    %141 = arith.addf %139, %140 : vector<2x128xf32>
    %142 = arith.negf %141 : vector<2x128xf32>
    %143 = math.exp %142 : vector<2x128xf32>
    %cst_43 = arith.constant 1.000000e+00 : f32
    %144 = vector.broadcast %cst_43 : f32 to vector<2x128xf32>
    %145 = arith.addf %144, %143 : vector<2x128xf32>
    %146 = arith.divf %144, %145 : vector<2x128xf32>
    %147 = vector.extract_strided_slice %135 {offsets = [0, 128], sizes = [2, 128], strides = [1, 1]} : vector<2x384xf32> to vector<2x128xf32>
    %148 = vector.extract_strided_slice %138 {offsets = [0, 128], sizes = [2, 128], strides = [1, 1]} : vector<2x384xf32> to vector<2x128xf32>
    %149 = arith.addf %147, %148 : vector<2x128xf32>
    %150 = arith.negf %149 : vector<2x128xf32>
    %151 = math.exp %150 : vector<2x128xf32>
    %cst_44 = arith.constant 1.000000e+00 : f32
    %152 = vector.broadcast %cst_44 : f32 to vector<2x128xf32>
    %153 = arith.addf %152, %151 : vector<2x128xf32>
    %154 = arith.divf %152, %153 : vector<2x128xf32>
    %155 = vector.extract_strided_slice %135 {offsets = [0, 256], sizes = [2, 128], strides = [1, 1]} : vector<2x384xf32> to vector<2x128xf32>
    %156 = vector.extract_strided_slice %138 {offsets = [0, 256], sizes = [2, 128], strides = [1, 1]} : vector<2x384xf32> to vector<2x128xf32>
    %157 = arith.mulf %146, %156 : vector<2x128xf32>
    %158 = arith.addf %155, %157 : vector<2x128xf32>
    %159 = math.tanh %158 : vector<2x128xf32>
    %cst_45 = arith.constant 1.000000e+00 : f32
    %160 = vector.broadcast %cst_45 : f32 to vector<2x128xf32>
    %161 = arith.subf %160, %154 : vector<2x128xf32>
    %162 = arith.mulf %161, %159 : vector<2x128xf32>
    %163 = arith.mulf %154, %133 : vector<2x128xf32>
    %164 = arith.addf %162, %163 : vector<2x128xf32>
    %c6_46 = arith.constant 6 : index
    %c0_47 = arith.constant 0 : index
    %165 = vector.load %arg9[%c6_46, %c0_47] : memref<16x128xf32, #tpu.memory_space<vmem>>, vector<2x128xf32>
    tpu.vector_store %arg9[%c6_46, %c0_47], %164 {strides = array<i32>} : memref<16x128xf32, #tpu.memory_space<vmem>>, vector<2x128xf32>,
    %166 = vector.extract_strided_slice %38 {offsets = [8, 0], sizes = [2, 384], strides = [1, 1]} : vector<16x384xf32> to vector<2x384xf32>
    %cst_48 = arith.constant dense<0.000000e+00> : vector<2x384xf32>
    %167 = tpu.matmul %164, %39, %cst_48 {dimension_numbers = #tpu.dot_dimension_numbers<[1], [0], [0], [1], [0, 0, 1, 1], [], []>} : vector<2x128xf32>, vector<128x384xf32>, vector<2x384xf32> -> vector<2x384xf32>
    %168 = vector.broadcast %40 : vector<1x384xf32> to vector<2x384xf32>
    %169 = arith.addf %167, %168 : vector<2x384xf32>
    %170 = vector.extract_strided_slice %166 {offsets = [0, 0], sizes = [2, 128], strides = [1, 1]} : vector<2x384xf32> to vector<2x128xf32>
    %171 = vector.extract_strided_slice %169 {offsets = [0, 0], sizes = [2, 128], strides = [1, 1]} : vector<2x384xf32> to vector<2x128xf32>
    %172 = arith.addf %170, %171 : vector<2x128xf32>
    %173 = arith.negf %172 : vector<2x128xf32>
    %174 = math.exp %173 : vector<2x128xf32>
    %cst_49 = arith.constant 1.000000e+00 : f32
    %175 = vector.broadcast %cst_49 : f32 to vector<2x128xf32>
    %176 = arith.addf %175, %174 : vector<2x128xf32>
    %177 = arith.divf %175, %176 : vector<2x128xf32>
    %178 = vector.extract_strided_slice %166 {offsets = [0, 128], sizes = [2, 128], strides = [1, 1]} : vector<2x384xf32> to vector<2x128xf32>
    %179 = vector.extract_strided_slice %169 {offsets = [0, 128], sizes = [2, 128], strides = [1, 1]} : vector<2x384xf32> to vector<2x128xf32>
    %180 = arith.addf %178, %179 : vector<2x128xf32>
    %181 = arith.negf %180 : vector<2x128xf32>
    %182 = math.exp %181 : vector<2x128xf32>
    %cst_50 = arith.constant 1.000000e+00 : f32
    %183 = vector.broadcast %cst_50 : f32 to vector<2x128xf32>
    %184 = arith.addf %183, %182 : vector<2x128xf32>
    %185 = arith.divf %183, %184 : vector<2x128xf32>
    %186 = vector.extract_strided_slice %166 {offsets = [0, 256], sizes = [2, 128], strides = [1, 1]} : vector<2x384xf32> to vector<2x128xf32>
    %187 = vector.extract_strided_slice %169 {offsets = [0, 256], sizes = [2, 128], strides = [1, 1]} : vector<2x384xf32> to vector<2x128xf32>
    %188 = arith.mulf %177, %187 : vector<2x128xf32>
    %189 = arith.addf %186, %188 : vector<2x128xf32>
    %190 = math.tanh %189 : vector<2x128xf32>
    %cst_51 = arith.constant 1.000000e+00 : f32
    %191 = vector.broadcast %cst_51 : f32 to vector<2x128xf32>
    %192 = arith.subf %191, %185 : vector<2x128xf32>
    %193 = arith.mulf %192, %190 : vector<2x128xf32>
    %194 = arith.mulf %185, %164 : vector<2x128xf32>
    %195 = arith.addf %193, %194 : vector<2x128xf32>
    %c8_52 = arith.constant 8 : index
    %c0_53 = arith.constant 0 : index
    %196 = vector.load %arg9[%c8_52, %c0_53] : memref<16x128xf32, #tpu.memory_space<vmem>>, vector<2x128xf32>
    tpu.vector_store %arg9[%c8_52, %c0_53], %195 {strides = array<i32>} : memref<16x128xf32, #tpu.memory_space<vmem>>, vector<2x128xf32>,
    %197 = vector.extract_strided_slice %38 {offsets = [10, 0], sizes = [2, 384], strides = [1, 1]} : vector<16x384xf32> to vector<2x384xf32>
    %cst_54 = arith.constant dense<0.000000e+00> : vector<2x384xf32>
    %198 = tpu.matmul %195, %39, %cst_54 {dimension_numbers = #tpu.dot_dimension_numbers<[1], [0], [0], [1], [0, 0, 1, 1], [], []>} : vector<2x128xf32>, vector<128x384xf32>, vector<2x384xf32> -> vector<2x384xf32>
    %199 = vector.broadcast %40 : vector<1x384xf32> to vector<2x384xf32>
    %200 = arith.addf %198, %199 : vector<2x384xf32>
    %201 = vector.extract_strided_slice %197 {offsets = [0, 0], sizes = [2, 128], strides = [1, 1]} : vector<2x384xf32> to vector<2x128xf32>
    %202 = vector.extract_strided_slice %200 {offsets = [0, 0], sizes = [2, 128], strides = [1, 1]} : vector<2x384xf32> to vector<2x128xf32>
    %203 = arith.addf %201, %202 : vector<2x128xf32>
    %204 = arith.negf %203 : vector<2x128xf32>
    %205 = math.exp %204 : vector<2x128xf32>
    %cst_55 = arith.constant 1.000000e+00 : f32
    %206 = vector.broadcast %cst_55 : f32 to vector<2x128xf32>
    %207 = arith.addf %206, %205 : vector<2x128xf32>
    %208 = arith.divf %206, %207 : vector<2x128xf32>
    %209 = vector.extract_strided_slice %197 {offsets = [0, 128], sizes = [2, 128], strides = [1, 1]} : vector<2x384xf32> to vector<2x128xf32>
    %210 = vector.extract_strided_slice %200 {offsets = [0, 128], sizes = [2, 128], strides = [1, 1]} : vector<2x384xf32> to vector<2x128xf32>
    %211 = arith.addf %209, %210 : vector<2x128xf32>
    %212 = arith.negf %211 : vector<2x128xf32>
    %213 = math.exp %212 : vector<2x128xf32>
    %cst_56 = arith.constant 1.000000e+00 : f32
    %214 = vector.broadcast %cst_56 : f32 to vector<2x128xf32>
    %215 = arith.addf %214, %213 : vector<2x128xf32>
    %216 = arith.divf %214, %215 : vector<2x128xf32>
    %217 = vector.extract_strided_slice %197 {offsets = [0, 256], sizes = [2, 128], strides = [1, 1]} : vector<2x384xf32> to vector<2x128xf32>
    %218 = vector.extract_strided_slice %200 {offsets = [0, 256], sizes = [2, 128], strides = [1, 1]} : vector<2x384xf32> to vector<2x128xf32>
    %219 = arith.mulf %208, %218 : vector<2x128xf32>
    %220 = arith.addf %217, %219 : vector<2x128xf32>
    %221 = math.tanh %220 : vector<2x128xf32>
    %cst_57 = arith.constant 1.000000e+00 : f32
    %222 = vector.broadcast %cst_57 : f32 to vector<2x128xf32>
    %223 = arith.subf %222, %216 : vector<2x128xf32>
    %224 = arith.mulf %223, %221 : vector<2x128xf32>
    %225 = arith.mulf %216, %195 : vector<2x128xf32>
    %226 = arith.addf %224, %225 : vector<2x128xf32>
    %c10_58 = arith.constant 10 : index
    %c0_59 = arith.constant 0 : index
    %227 = vector.load %arg9[%c10_58, %c0_59] : memref<16x128xf32, #tpu.memory_space<vmem>>, vector<2x128xf32>
    tpu.vector_store %arg9[%c10_58, %c0_59], %226 {strides = array<i32>} : memref<16x128xf32, #tpu.memory_space<vmem>>, vector<2x128xf32>,
    %228 = vector.extract_strided_slice %38 {offsets = [12, 0], sizes = [2, 384], strides = [1, 1]} : vector<16x384xf32> to vector<2x384xf32>
    %cst_60 = arith.constant dense<0.000000e+00> : vector<2x384xf32>
    %229 = tpu.matmul %226, %39, %cst_60 {dimension_numbers = #tpu.dot_dimension_numbers<[1], [0], [0], [1], [0, 0, 1, 1], [], []>} : vector<2x128xf32>, vector<128x384xf32>, vector<2x384xf32> -> vector<2x384xf32>
    %230 = vector.broadcast %40 : vector<1x384xf32> to vector<2x384xf32>
    %231 = arith.addf %229, %230 : vector<2x384xf32>
    %232 = vector.extract_strided_slice %228 {offsets = [0, 0], sizes = [2, 128], strides = [1, 1]} : vector<2x384xf32> to vector<2x128xf32>
    %233 = vector.extract_strided_slice %231 {offsets = [0, 0], sizes = [2, 128], strides = [1, 1]} : vector<2x384xf32> to vector<2x128xf32>
    %234 = arith.addf %232, %233 : vector<2x128xf32>
    %235 = arith.negf %234 : vector<2x128xf32>
    %236 = math.exp %235 : vector<2x128xf32>
    %cst_61 = arith.constant 1.000000e+00 : f32
    %237 = vector.broadcast %cst_61 : f32 to vector<2x128xf32>
    %238 = arith.addf %237, %236 : vector<2x128xf32>
    %239 = arith.divf %237, %238 : vector<2x128xf32>
    %240 = vector.extract_strided_slice %228 {offsets = [0, 128], sizes = [2, 128], strides = [1, 1]} : vector<2x384xf32> to vector<2x128xf32>
    %241 = vector.extract_strided_slice %231 {offsets = [0, 128], sizes = [2, 128], strides = [1, 1]} : vector<2x384xf32> to vector<2x128xf32>
    %242 = arith.addf %240, %241 : vector<2x128xf32>
    %243 = arith.negf %242 : vector<2x128xf32>
    %244 = math.exp %243 : vector<2x128xf32>
    %cst_62 = arith.constant 1.000000e+00 : f32
    %245 = vector.broadcast %cst_62 : f32 to vector<2x128xf32>
    %246 = arith.addf %245, %244 : vector<2x128xf32>
    %247 = arith.divf %245, %246 : vector<2x128xf32>
    %248 = vector.extract_strided_slice %228 {offsets = [0, 256], sizes = [2, 128], strides = [1, 1]} : vector<2x384xf32> to vector<2x128xf32>
    %249 = vector.extract_strided_slice %231 {offsets = [0, 256], sizes = [2, 128], strides = [1, 1]} : vector<2x384xf32> to vector<2x128xf32>
    %250 = arith.mulf %239, %249 : vector<2x128xf32>
    %251 = arith.addf %248, %250 : vector<2x128xf32>
    %252 = math.tanh %251 : vector<2x128xf32>
    %cst_63 = arith.constant 1.000000e+00 : f32
    %253 = vector.broadcast %cst_63 : f32 to vector<2x128xf32>
    %254 = arith.subf %253, %247 : vector<2x128xf32>
    %255 = arith.mulf %254, %252 : vector<2x128xf32>
    %256 = arith.mulf %247, %226 : vector<2x128xf32>
    %257 = arith.addf %255, %256 : vector<2x128xf32>
    %c12_64 = arith.constant 12 : index
    %c0_65 = arith.constant 0 : index
    %258 = vector.load %arg9[%c12_64, %c0_65] : memref<16x128xf32, #tpu.memory_space<vmem>>, vector<2x128xf32>
    tpu.vector_store %arg9[%c12_64, %c0_65], %257 {strides = array<i32>} : memref<16x128xf32, #tpu.memory_space<vmem>>, vector<2x128xf32>,
    %259 = vector.extract_strided_slice %38 {offsets = [14, 0], sizes = [2, 384], strides = [1, 1]} : vector<16x384xf32> to vector<2x384xf32>
    %cst_66 = arith.constant dense<0.000000e+00> : vector<2x384xf32>
    %260 = tpu.matmul %257, %39, %cst_66 {dimension_numbers = #tpu.dot_dimension_numbers<[1], [0], [0], [1], [0, 0, 1, 1], [], []>} : vector<2x128xf32>, vector<128x384xf32>, vector<2x384xf32> -> vector<2x384xf32>
    %261 = vector.broadcast %40 : vector<1x384xf32> to vector<2x384xf32>
    %262 = arith.addf %260, %261 : vector<2x384xf32>
    %263 = vector.extract_strided_slice %259 {offsets = [0, 0], sizes = [2, 128], strides = [1, 1]} : vector<2x384xf32> to vector<2x128xf32>
    %264 = vector.extract_strided_slice %262 {offsets = [0, 0], sizes = [2, 128], strides = [1, 1]} : vector<2x384xf32> to vector<2x128xf32>
    %265 = arith.addf %263, %264 : vector<2x128xf32>
    %266 = arith.negf %265 : vector<2x128xf32>
    %267 = math.exp %266 : vector<2x128xf32>
    %cst_67 = arith.constant 1.000000e+00 : f32
    %268 = vector.broadcast %cst_67 : f32 to vector<2x128xf32>
    %269 = arith.addf %268, %267 : vector<2x128xf32>
    %270 = arith.divf %268, %269 : vector<2x128xf32>
    %271 = vector.extract_strided_slice %259 {offsets = [0, 128], sizes = [2, 128], strides = [1, 1]} : vector<2x384xf32> to vector<2x128xf32>
    %272 = vector.extract_strided_slice %262 {offsets = [0, 128], sizes = [2, 128], strides = [1, 1]} : vector<2x384xf32> to vector<2x128xf32>
    %273 = arith.addf %271, %272 : vector<2x128xf32>
    %274 = arith.negf %273 : vector<2x128xf32>
    %275 = math.exp %274 : vector<2x128xf32>
    %cst_68 = arith.constant 1.000000e+00 : f32
    %276 = vector.broadcast %cst_68 : f32 to vector<2x128xf32>
    %277 = arith.addf %276, %275 : vector<2x128xf32>
    %278 = arith.divf %276, %277 : vector<2x128xf32>
    %279 = vector.extract_strided_slice %259 {offsets = [0, 256], sizes = [2, 128], strides = [1, 1]} : vector<2x384xf32> to vector<2x128xf32>
    %280 = vector.extract_strided_slice %262 {offsets = [0, 256], sizes = [2, 128], strides = [1, 1]} : vector<2x384xf32> to vector<2x128xf32>
    %281 = arith.mulf %270, %280 : vector<2x128xf32>
    %282 = arith.addf %279, %281 : vector<2x128xf32>
    %283 = math.tanh %282 : vector<2x128xf32>
    %cst_69 = arith.constant 1.000000e+00 : f32
    %284 = vector.broadcast %cst_69 : f32 to vector<2x128xf32>
    %285 = arith.subf %284, %278 : vector<2x128xf32>
    %286 = arith.mulf %285, %283 : vector<2x128xf32>
    %287 = arith.mulf %278, %257 : vector<2x128xf32>
    %288 = arith.addf %286, %287 : vector<2x128xf32>
    %c14_70 = arith.constant 14 : index
    %c0_71 = arith.constant 0 : index
    %289 = vector.load %arg9[%c14_70, %c0_71] : memref<16x128xf32, #tpu.memory_space<vmem>>, vector<2x128xf32>
    tpu.vector_store %arg9[%c14_70, %c0_71], %288 {strides = array<i32>} : memref<16x128xf32, #tpu.memory_space<vmem>>, vector<2x128xf32>,
    %c0_72 = arith.constant 0 : index
    %c0_73 = arith.constant 0 : index
    %290 = vector.load %arg9[%c0_72, %c0_73] : memref<16x128xf32, #tpu.memory_space<vmem>>, vector<16x128xf32>
    %c0_74 = arith.constant 0 : index
    %c0_75 = arith.constant 0 : index
    %291 = vector.load %arg6[%c0_74, %c0_75] : memref<1x4xf32, #tpu.memory_space<vmem>>, vector<1x4xf32>
    %292 = vector.shape_cast %291 : vector<1x4xf32> to vector<1x4xf32>
    %293 = vector.broadcast %292 : vector<1x4xf32> to vector<10x4xf32>
    %c0_76 = arith.constant 0 : index
    %c0_77 = arith.constant 0 : index
    %c0_78 = arith.constant 0 : index
    %294 = vector.load %arg5[%c0_76, %c0_77, %c0_78] : memref<4x128x4xf32, #tpu.memory_space<vmem>>, vector<1x128x4xf32>
    %295 = vector.shape_cast %294 : vector<1x128x4xf32> to vector<128x4xf32>
    %cst_79 = arith.constant dense<0.000000e+00> : vector<16x4xf32>
    %296 = tpu.matmul %290, %295, %cst_79 {dimension_numbers = #tpu.dot_dimension_numbers<[1], [0], [0], [1], [0, 0, 1, 1], [], []>} : vector<16x128xf32>, vector<128x4xf32>, vector<16x4xf32> -> vector<16x4xf32>
    %297 = vector.extract_strided_slice %296 {offsets = [0, 0], sizes = [10, 4], strides = [1, 1]} : vector<16x4xf32> to vector<10x4xf32>
    %298 = arith.addf %293, %297 : vector<10x4xf32>
    %c1 = arith.constant 1 : index
    %c0_80 = arith.constant 0 : index
    %c0_81 = arith.constant 0 : index
    %299 = vector.load %arg5[%c1, %c0_80, %c0_81] : memref<4x128x4xf32, #tpu.memory_space<vmem>>, vector<1x128x4xf32>
    %300 = vector.shape_cast %299 : vector<1x128x4xf32> to vector<128x4xf32>
    %cst_82 = arith.constant dense<0.000000e+00> : vector<16x4xf32>
    %301 = tpu.matmul %290, %300, %cst_82 {dimension_numbers = #tpu.dot_dimension_numbers<[1], [0], [0], [1], [0, 0, 1, 1], [], []>} : vector<16x128xf32>, vector<128x4xf32>, vector<16x4xf32> -> vector<16x4xf32>
    %302 = vector.extract_strided_slice %301 {offsets = [2, 0], sizes = [10, 4], strides = [1, 1]} : vector<16x4xf32> to vector<10x4xf32>
    %303 = arith.addf %298, %302 : vector<10x4xf32>
    %c2_83 = arith.constant 2 : index
    %c0_84 = arith.constant 0 : index
    %c0_85 = arith.constant 0 : index
    %304 = vector.load %arg5[%c2_83, %c0_84, %c0_85] : memref<4x128x4xf32, #tpu.memory_space<vmem>>, vector<1x128x4xf32>
    %305 = vector.shape_cast %304 : vector<1x128x4xf32> to vector<128x4xf32>
    %cst_86 = arith.constant dense<0.000000e+00> : vector<16x4xf32>
    %306 = tpu.matmul %290, %305, %cst_86 {dimension_numbers = #tpu.dot_dimension_numbers<[1], [0], [0], [1], [0, 0, 1, 1], [], []>} : vector<16x128xf32>, vector<128x4xf32>, vector<16x4xf32> -> vector<16x4xf32>
    %307 = vector.extract_strided_slice %306 {offsets = [4, 0], sizes = [10, 4], strides = [1, 1]} : vector<16x4xf32> to vector<10x4xf32>
    %308 = arith.addf %303, %307 : vector<10x4xf32>
    %c3 = arith.constant 3 : index
    %c0_87 = arith.constant 0 : index
    %c0_88 = arith.constant 0 : index
    %309 = vector.load %arg5[%c3, %c0_87, %c0_88] : memref<4x128x4xf32, #tpu.memory_space<vmem>>, vector<1x128x4xf32>
    %310 = vector.shape_cast %309 : vector<1x128x4xf32> to vector<128x4xf32>
    %cst_89 = arith.constant dense<0.000000e+00> : vector<16x4xf32>
    %311 = tpu.matmul %290, %310, %cst_89 {dimension_numbers = #tpu.dot_dimension_numbers<[1], [0], [0], [1], [0, 0, 1, 1], [], []>} : vector<16x128xf32>, vector<128x4xf32>, vector<16x4xf32> -> vector<16x4xf32>
    %312 = vector.extract_strided_slice %311 {offsets = [6, 0], sizes = [10, 4], strides = [1, 1]} : vector<16x4xf32> to vector<10x4xf32>
    %313 = arith.addf %308, %312 : vector<10x4xf32>
    %cst_90 = arith.constant 2.000000e+01 : f32
    %314 = vector.broadcast %cst_90 : f32 to vector<10x4xf32>
    %315 = arith.cmpf ogt, %313, %314 : vector<10x4xf32>
    %cst_91 = arith.constant 2.000000e+01 : f32
    %316 = vector.broadcast %cst_91 : f32 to vector<10x4xf32>
    %317 = arith.minimumf %313, %316 : vector<10x4xf32>
    %318 = math.exp %317 : vector<10x4xf32>
    %319 = math.log1p %318 : vector<10x4xf32>
    %320 = arith.select %315, %313, %319 : vector<10x4xi1>, vector<10x4xf32>
    %c0_92 = arith.constant 0 : index
    %c0_93 = arith.constant 0 : index
    %321 = vector.load %arg7[%c0_92, %c0_93] : memref<10x4xf32, #tpu.memory_space<vmem>>, vector<10x4xf32>
    tpu.vector_store %arg7[%c0_92, %c0_93], %320 {strides = array<i32>} : memref<10x4xf32, #tpu.memory_space<vmem>>, vector<10x4xf32>,
    return
  }
}

</mosaic_0001>

<bundles_post_ra>
// kernel: traj_model_conv_forward.1
= control target key start
LH: loop header
LB: loop body
LE: loop exit
PB: predicated region body
PF: predicated region fallthrough
CT: control target
= control target key end

     0   :  { %v3678_v3 = vmov 0.0   ;;  %vm42_vm0 = vcmask 1041408   ;;  %vm3680_vm3 = vmmov 0   ;;  %vm1950_vm4 = vcmask 1045504   ;;  %s4736_s1 = inlined_call_operand.vmem [shape: f32[128,384], index: 1, kind: input, shape index: {}]   ;;  %s4737_s0 = inlined_call_operand.vmem [shape: f32[8,2,128], index: 0, kind: input, shape index: {}]   ;;  %s4738_s2 = inlined_call_operand.vmem [shape: f32[128,384], index: 2, kind: input, shape index: {}]   ;;  %s4739_s3 = inlined_call_operand.vmem [shape: f32[1,384], index: 3, kind: input, shape index: {}]   ;;  %s4740_s4 = inlined_call_operand.vmem [shape: f32[1,384], index: 4, kind: input, shape index: {}]   ;;  %s4741_s5 = inlined_call_operand.vmem [shape: f32[4,128,4], index: 5, kind: input, shape index: {}]   ;;  %s4742_s6 = inlined_call_operand.vmem [shape: f32[1,4], index: 6, kind: input, shape index: {}]   ;;  %s4743_s7 = inlined_call_operand.vmem [shape: f32[10,4], index: 7, kind: output, shape index: {}]  }
   0x1   :  { %v86_v0 = vld [vmem:[%s4736_s1 + $0x8] sm:$0xff]  ;;  %v89_v1 = vld [vmem:[%s4736_s1 + $0x20] sm:$0xff]  ;;  %214 = vmatprep.mubr.f32.mxu0 %v3678_v3  ;;  %v88_v5 = vld [vmem:[%s4736_s1 + $0x18] sm:$0xff]  ;;  %vm2052_vm5 = vcmask 1043456   ;;  %vm2191_vm7 = vcmask 25600   ;;  %vm2189_vm10 = vcmask 31744  }
   0x2   :  { %v85_v2 = vld [vmem:[%s4736_s1] sm:$0xff]  ;;  %v2943_v4 = vpack.c.bf16 %v89_v1, %v86_v0  ;;  %v92_v6 = vld [vmem:[%s4736_s1 + $0x38] sm:$0xff]  ;;  %v95_v7 = vld [vmem:[%s4736_s1 + $0x50] sm:$0xff] }
   0x3   :  { %v2945_v8 = vpack.c.bf16 %v88_v5, %v85_v2  ;;  %v2947_v9 = vpack.c.bf16 %v95_v7, %v92_v6  ;;  %v91_v10 = vld [vmem:[%s4736_s1 + $0x30] sm:$0xff]  ;;  %v94_v11 = vld [vmem:[%s4736_s1 + $0x48] sm:$0xff]  ;;  %v101_v13 = vld [vmem:[%s4736_s1 + $0x80] sm:$0xff] }
   0x4   :  { %v98_v12 = vld [vmem:[%s4736_s1 + $0x68] sm:$0xff]  ;;  %2944 = vmatprep.subr.bf16.mxu0 %v2943_v4  ;;  %v2949_v14 = vpack.c.bf16 %v94_v11, %v91_v10  ;;  %v97_v16 = vld [vmem:[%s4736_s1 + $0x60] sm:$0xff]  ;;  %v100_v17 = vld [vmem:[%s4736_s1 + $0x78] sm:$0xff] }
   0x5   :  { %2946 = vmatpush1.bf16.msra.mxu0 %v2945_v8  ;;  %v2951_v15 = vpack.c.bf16 %v101_v13, %v98_v12  ;;  %v104_v18 = vld [vmem:[%s4736_s1 + $0x98] sm:$0xff]  ;;  %v107_v19 = vld [vmem:[%s4736_s1 + $0xb0] sm:$0xff]  ;;  %v2953_v20 = vpack.c.bf16 %v100_v17, %v97_v16  ;;  %v106_v23 = vld [vmem:[%s4736_s1 + $0xa8] sm:$0xff] }
   0x6   :  { %2948 = vmatprep.subr.bf16.mxu0 %v2947_v9  ;;  %v103_v21 = vld [vmem:[%s4736_s1 + $0x90] sm:$0xff]  ;;  %v2955_v22 = vpack.c.bf16 %v107_v19, %v104_v18  ;;  %v90_v25 = vld [vmem:[%s4736_s1 + $0x28] sm:$0xff]  ;;  %v113_v27 = vld [vmem:[%s4736_s1 + $0xe0] sm:$0xff] }
   0x7   :  { %v87_v24 = vld [vmem:[%s4736_s1 + $0x10] sm:$0xff]  ;;  %v110_v26 = vld [vmem:[%s4736_s1 + $0xc8] sm:$0xff]  ;;  %v93_v29 = vld [vmem:[%s4736_s1 + $0x40] sm:$0xff]  ;;  %v2957_v31 = vpack.c.bf16 %v106_v23, %v103_v21 }
   0x8   :  { %v2975_v28 = vpack.c.bf16 %v90_v25, %v87_v24  ;;  %v96_v30 = vld [vmem:[%s4736_s1 + $0x58] sm:$0xff]  ;;  %v109_v32 = vld [vmem:[%s4736_s1 + $0xc0] sm:$0xff]  ;;  %v2959_v36 = vpack.c.bf16 %v113_v27, %v110_v26  ;;  %v119_v42 = vld [vmem:[%s4736_s1 + $0x110] sm:$0xff] }
   0x9   :  { %2950 = vmatpush1.bf16.msra.mxu0 %v2949_v14  ;;  %v112_v33 = vld [vmem:[%s4736_s1 + $0xd8] sm:$0xff]  ;;  %v2979_v34 = vpack.c.bf16 %v96_v30, %v93_v29  ;;  %v3797_v35 = vld [vmem:[%s4737_s0] sm:$0x3]  ;;  %v3802_v37 = vld [vmem:[%s4737_s0 + $0x2] sm:$0x3] }
   0xa   :  { %2952 = vmatprep.subr.bf16.mxu0 %v2951_v15  ;;  %2976 = vmatprep.subr.bf16.mxu1 %v2975_v28  ;;  %v3807_v38 = vld [vmem:[%s4737_s0 + $0x4] sm:$0x3]  ;;  %v3812_v39 = vld [vmem:[%s4737_s0 + $0x6] sm:$0x3]  ;;  %v34_v40 = vmul.f32 %v3797_v35, %v3797_v35  ;;  %v116_v41 = vld [vmem:[%s4736_s1 + $0xf8] sm:$0xff]  ;;  %v35_v44 = vmul.f32 %v3802_v37, %v3802_v37  ;;  %v2961_v49 = vpack.c.bf16 %v112_v33, %v109_v32 }
   0xb   :  { %2978 = vmatpush3.bf16.msra.mxu1 %v2975_v28  ;;  %v3825_v43 = vld [vmem:[%s4737_s0 + $0x8] sm:$0x3]  ;;  %v36_v45 = vmul.f32 %v3807_v38, %v3807_v38  ;;  %v37_v46 = vmul.f32 %v3812_v39, %v3812_v39  ;;  %v3836_v47 = vld [vmem:[%s4737_s0 + $0xa] sm:$0x3]  ;;  %v115_v50 = vld [vmem:[%s4736_s1 + $0xf0] sm:$0xff]  ;;  %v2963_v56 = vpack.c.bf16 %v119_v42, %v116_v41 }
   0xc   :  { %2980 = vmatprep.subr.bf16.mxu1 %v2979_v34  ;;  %v43_v48 = vsel %vm42_vm0, %v34_v40, 0.0  ;;  %v38_v51 = vmul.f32 %v3825_v43, %v3825_v43  ;;  %v44_v52 = vsel %vm42_vm0, %v35_v44, 0.0  ;;  %v99_v54 = vld [vmem:[%s4736_s1 + $0x70] sm:$0xff]  ;;  %v102_v55 = vld [vmem:[%s4736_s1 + $0x88] sm:$0xff]  ;;  %v125_v61 = vld [vmem:[%s4736_s1 + $0x140] sm:$0xff]  ;;  %v39_v62 = vmul.f32 %v3836_v47, %v3836_v47 }
   0xd   :  { %2954 = vmatpush1.bf16.msra.mxu0 %v2953_v20  ;;  %v46_v53 = vsel %vm42_vm0, %v36_v45, 0.0  ;;  %v118_v57 = vld [vmem:[%s4736_s1 + $0x108] sm:$0xff]  ;;  %v45_v60 = vadd.f32 %v44_v52, %v43_v48  ;;  %v48_v63 = vsel %vm42_vm0, %v37_v46, 0.0  ;;  %v2983_v0 = vpack.c.bf16 %v102_v55, %v99_v54  ;;  %v105_v1 = vld [vmem:[%s4736_s1 + $0xa0] sm:$0xff]  ;;  %v108_v2 = vld [vmem:[%s4736_s1 + $0xb8] sm:$0xff] }
   0xe   :  { %2956 = vmatprep.subr.bf16.mxu0 %v2955_v22  ;;  %v122_v58 = vld [vmem:[%s4736_s1 + $0x128] sm:$0xff]  ;;  %v2987_v6 = vpack.c.bf16 %v108_v2, %v105_v1  ;;  %v2965_v7 = vpack.c.bf16 %v118_v57, %v115_v50  ;;  %v50_v9 = vsel %vm42_vm0, %v38_v51, 0.0  ;;  %v111_v10 = vld [vmem:[%s4736_s1 + $0xd0] sm:$0xff]  ;;  %v121_v13 = vld [vmem:[%s4736_s1 + $0x120] sm:$0xff]  ;;  %v52_v19 = vsel %vm42_vm0, %v39_v62, 0.0 }
   0xf   :  { %2982 = vmatpush3.bf16.msra.mxu1 %v2979_v34  ;;  %v3861_v59 = vld [vmem:[%s4737_s0 + $0xc] sm:$0x3]  ;;  %v3878_v4 = vld [vmem:[%s4737_s0 + $0xe] sm:$0x3]  ;;  %v47_v5 = vadd.f32 %v46_v53, %v45_v60  ;;  %v2967_v12 = vpack.c.bf16 %v125_v61, %v122_v58  ;;  %v124_v14 = vld [vmem:[%s4736_s1 + $0x138] sm:$0xff]  ;;  %v3679_v53 = vmov 0.0|0.0  }
  0x10   :  { %v40_v8 = vmul.f32 %v3861_v59, %v3861_v59  ;;  %2984 = vmatprep.subr.bf16.mxu1 %v2983_v0  ;;  %v114_v11 = vld [vmem:[%s4736_s1 + $0xe8] sm:$0xff]  ;;  %v128_v16 = vld [vmem:[%s4736_s1 + $0x158] sm:$0xff]  ;;  %v131_v17 = vld [vmem:[%s4736_s1 + $0x170] sm:$0xff]  ;;  %v41_v18 = vmul.f32 %v3878_v4, %v3878_v4  ;;  %v2969_v24 = vpack.c.bf16 %v124_v14, %v121_v13 }
  0x11   :  { %2958 = vmatpush1.bf16.msra.mxu0 %v2957_v31  ;;  %v49_v15 = vadd.f32 %v48_v63, %v47_v5  ;;  %v2991_v20 = vpack.c.bf16 %v114_v11, %v111_v10  ;;  %v117_v22 = vld [vmem:[%s4736_s1 + $0x100] sm:$0xff]  ;;  %v120_v23 = vld [vmem:[%s4736_s1 + $0x118] sm:$0xff]  ;;  %v2971_v26 = vpack.c.bf16 %v131_v17, %v128_v16  ;;  %v127_v27 = vld [vmem:[%s4736_s1 + $0x150] sm:$0xff] }
  0x12   :  { %2960 = vmatprep.subr.bf16.mxu0 %v2959_v36  ;;  %v54_v25 = vsel %vm42_vm0, %v40_v8, 0.0  ;;  %v130_v28 = vld [vmem:[%s4736_s1 + $0x168] sm:$0xff]  ;;  %v306_v31 = vld [vmem:[%s4738_s2 + $0x20] sm:$0xff]  ;;  %v56_v32 = vsel %vm42_vm0, %v41_v18, 0.0  ;;  %v2995_v33 = vpack.c.bf16 %v120_v23, %v117_v22  ;;  %v123_v36 = vld [vmem:[%s4736_s1 + $0x130] sm:$0xff] }
  0x13   :  { %2986 = vmatpush3.bf16.msra.mxu1 %v2983_v0  ;;  %v51_v21 = vadd.f32 %v50_v9, %v49_v15  ;;  %v303_v30 = vld [vmem:[%s4738_s2 + $0x8] sm:$0xff]  ;;  %v2973_v41 = vpack.c.bf16 %v130_v28, %v127_v27  ;;  %v129_v46 = vld [vmem:[%s4736_s1 + $0x160] sm:$0xff]  ;;  %v132_v48 = vld [vmem:[%s4736_s1 + $0x178] sm:$0xff] }
  0x14   :  { %2988 = vmatprep.subr.bf16.mxu1 %v2987_v6  ;;  %v126_v40 = vld [vmem:[%s4736_s1 + $0x148] sm:$0xff]  ;;  %v3930_v42 = vpack.c.bf16 %v306_v31, %v303_v30  ;;  %v308_v5 = vld [vmem:[%s4738_s2 + $0x30] sm:$0xff]  ;;  %v318_v9 = vld [vmem:[%s4738_s2 + $0x80] sm:$0xff] }
  0x15   :  { %2962 = vmatpush1.bf16.msra.mxu0 %v2961_v49  ;;  %v53_v29 = vadd.f32 %v52_v19, %v51_v21  ;;  %v2999_v45 = vpack.c.bf16 %v126_v40, %v123_v36  ;;  %v3003_v49 = vpack.c.bf16 %v132_v48, %v129_v46  ;;  %v315_v8 = vld [vmem:[%s4738_s2 + $0x68] sm:$0xff]  ;;  %v313_v13 = vld [vmem:[%s4738_s2 + $0x58] sm:$0xff]  ;;  %v314_v16 = vld [vmem:[%s4738_s2 + $0x60] sm:$0xff] }
  0x16   :  { %2964 = vmatprep.subr.bf16.mxu0 %v2963_v56  ;;  %v3995_v15 = vpack.c.bf16 %v318_v9, %v315_v8  ;;  %v317_v17 = vld [vmem:[%s4738_s2 + $0x78] sm:$0xff]  ;;  %v324_v19 = vld [vmem:[%s4738_s2 + $0xb0] sm:$0xff]  ;;  %v319_v22 = vld [vmem:[%s4738_s2 + $0x88] sm:$0xff]  ;;  %v135_v9 = vlaneseq }
  0x17   :  { %2990 = vmatpush3.bf16.msra.mxu1 %v2987_v6  ;;  %v55_v34 = vadd.f32 %v54_v25, %v53_v29  ;;  %v311_v6 = vld [vmem:[%s4738_s2 + $0x48] sm:$0xff]  ;;  %v321_v18 = vld [vmem:[%s4738_s2 + $0x98] sm:$0xff]  ;;  %v316_v21 = vld [vmem:[%s4738_s2 + $0x70] sm:$0xff]  ;;  %v4022_v23 = vpack.c.bf16 %v317_v17, %v314_v16 }
  0x18   :  { %2992 = vmatprep.subr.bf16.mxu1 %v2991_v20  ;;  %v3991_v14 = vpack.c.bf16 %v311_v6, %v308_v5  ;;  %v320_v25 = vld [vmem:[%s4738_s2 + $0x90] sm:$0xff]  ;;  %v327_v27 = vld [vmem:[%s4738_s2 + $0xc8] sm:$0xff]  ;;  %v330_v28 = vld [vmem:[%s4738_s2 + $0xe0] sm:$0xff]  ;;  %v4041_v29 = vpack.c.bf16 %v319_v22, %v316_v21 }
  0x19   :  { %2966 = vmatpush1.bf16.msra.mxu0 %v2965_v7  ;;  %v57_v44 = vadd.f32 %v56_v32, %v55_v34  ;;  %v322_v30 = vld [vmem:[%s4738_s2 + $0xa0] sm:$0xff]  ;;  %v325_v31 = vld [vmem:[%s4738_s2 + $0xb8] sm:$0xff]  ;;  %v331_v46 = vld [vmem:[%s4738_s2 + $0xe8] sm:$0xff] }
  0x1a   :  { %2968 = vmatprep.subr.bf16.mxu0 %v2967_v12  ;;  %v310_v12 = vld [vmem:[%s4738_s2 + $0x40] sm:$0xff]  ;;  %v329_v36 = vld [vmem:[%s4738_s2 + $0xd8] sm:$0xff] }
  0x1b   :  { %2994 = vmatpush3.bf16.msra.mxu1 %v2991_v20  ;;  %3586 = vrsqrt.f32 %v57_v44  ;;  %vm60_vm1 = vcmp.eq.f32.partialorder %v57_v44, inf  ;;  %v63_v51 = vand.u32 2147483648, %v57_v44  ;;  %vm62_vm2 = vcmp.eq.f32.partialorder %v57_v44, 0.0  ;;  %v326_v34 = vld [vmem:[%s4738_s2 + $0xc0] sm:$0xff]  ;;  %v333_v40 = vld [vmem:[%s4738_s2 + $0xf8] sm:$0xff] }
  0x1c   :  { %2996 = vmatprep.subr.bf16.mxu1 %v2995_v33  ;;  %v4010_v20 = vpack.c.bf16 %v313_v13, %v310_v12  ;;  %v4079_v48 = vpack.c.bf16 %v329_v36, %v326_v34  ;;  %v346_v5 = vld [vmem:[%s4738_s2 + $0x160] sm:$0xff]  ;;  %v349_v6 = vld [vmem:[%s4738_s2 + $0x178] sm:$0xff] }
  0x1d   :  { %2970 = vmatpush1.bf16.msra.mxu0 %v2969_v24  ;;  %v4026_v24 = vpack.c.bf16 %v324_v19, %v321_v18  ;;  %v4161_v8 = vpack.c.bf16 %v349_v6, %v346_v5  ;;  %v133_v13 = vld [vmem:[%s4739_s3] sm:$0x7] }
  0x1e   :  { %2972 = vmatprep.subr.bf16.mxu0 %v2971_v26  ;;  %v323_v26 = vld [vmem:[%s4738_s2 + $0xa8] sm:$0xff] }
  0x1f   :  { %2998 = vmatpush3.bf16.msra.mxu1 %v2995_v33  ;;  %v4051_v32 = vpack.c.bf16 %v323_v26, %v320_v25  ;;  %v4054_v33 = vpack.c.bf16 %v330_v28, %v327_v27 }
  0x20   :  { %3000 = vmatprep.subr.bf16.mxu1 %v2999_v45 }
  0x21   :  { %2974 = vmatpush1.bf16.msra.mxu0 %v2973_v41  ;;  %v336_v41 = vld [vmem:[%s4738_s2 + $0x110] sm:$0xff] }
  0x22   :  { %3008 = vmatprep.subr.bf16.mxu0 %v3930_v42 }
  0x23   :  { %3002 = vmatpush3.bf16.msra.mxu1 %v2999_v45  ;;  %v328_v45 = vld [vmem:[%s4738_s2 + $0xd0] sm:$0xff] }
  0x24   :  { %3004 = vmatprep.subr.bf16.mxu1 %v3003_v49 }
  0x25   :  { %v3587_v50 = vpop.eup %3586 }
  0x26   :  { %v59_v52 = vmul.f32 %v3587_v50, %v57_v44  ;;  %v332_v50 = vld [vmem:[%s4738_s2 + $0xf0] sm:$0xff] }
  0x27   :  { %3006 = vmatpush3.bf16.msra.mxu1 %v3003_v49  ;;  %v4082_v49 = vpack.c.bf16 %v336_v41, %v333_v40  ;;  %v350_v40 = vld [vmem:[%s4740_s4] sm:$0x7] }
  0x28   :  { %3039 = vmatprep.subr.bf16.mxu1 %v3679_v53  ;;  %v61_v54 = vsel %vm60_vm1, %v57_v44, %v59_v52  ;;  %v4069_v44 = vpack.c.bf16 %v325_v31, %v322_v30  ;;  %v339_v52 = vld [vmem:[%s4738_s2 + $0x128] sm:$0xff] }
  0x29   :  { %v64_v55 = vsel %vm62_vm2, %v63_v51, %v61_v54  ;;  %v335_v51 = vld [vmem:[%s4738_s2 + $0x108] sm:$0xff]  ;;  %v342_v54 = vld [vmem:[%s4738_s2 + $0x140] sm:$0xff] }
  0x2a   :  { %v65_v56 = vmax.f32 %v64_v55, 1e-12  ;;  %v4097_v55 = vpack.c.bf16 %v331_v46, %v328_v45 }
  0x2c   :  { %3588 = vrcp.f32 %v65_v56  ;;  %v334_v56 = vld [vmem:[%s4738_s2 + $0x100] sm:$0xff] }
  0x36   :  { %v3589_v57 = vpop.eup %3588 }
  0x37   :  { %v67_v58 = vmul.f32 %v3589_v57, %v3797_v35  ;;  %v68_v60 = vmul.f32 %v3589_v57, %v3802_v37  ;;  %v69_v61 = vmul.f32 %v3589_v57, %v3807_v38  ;;  %v70_v62 = vmul.f32 %v3589_v57, %v3812_v39  ;;  %v302_v35 = vld [vmem:[%s4738_s2] sm:$0xff]  ;;  %v305_v37 = vld [vmem:[%s4738_s2 + $0x18] sm:$0xff]  ;;  %v312_v39 = vld [vmem:[%s4738_s2 + $0x50] sm:$0xff] }
  0x38   :  { %v71_v63 = vmul.f32 %v3589_v57, %v3825_v43  ;;  %v72_v0 = vmul.f32 %v3589_v57, %v3836_v47  ;;  %v73_v1 = vmul.f32 %v3589_v57, %v3861_v59  ;;  %v74_v2 = vmul.f32 %v3589_v57, %v3878_v4  ;;  %v309_v38 = vld [vmem:[%s4738_s2 + $0x38] sm:$0xff]  ;;  %v304_v43 = vld [vmem:[%s4738_s2 + $0x10] sm:$0xff]  ;;  %v307_v47 = vld [vmem:[%s4738_s2 + $0x28] sm:$0xff] }
  0x39   :  { %75 = vst [vmem:[#allocation2] sm:$0x3] %v67_v58  ;;  %76 = vst [vmem:[#allocation2 + $0x2] sm:$0x3] %v68_v60  ;;  %v3966_v59 = vpack.c.bf16 %v305_v37, %v302_v35  ;;  %v3968_v4 = vpack.c.bf16 %v312_v39, %v309_v38  ;;  %v3982_v10 = vpack.c.bf16 %v307_v47, %v304_v43  ;;  %v337_v57 = vld [vmem:[%s4738_s2 + $0x118] sm:$0xff]  ;;  %v343_v35 = vld [vmem:[%s4738_s2 + $0x148] sm:$0xff] }
  0x3a   :  { %77 = vst [vmem:[#allocation2 + $0x4] sm:$0x3] %v69_v61  ;;  %78 = vst [vmem:[#allocation2 + $0x6] sm:$0x3] %v70_v62  ;;  %v4107_v58 = vpack.c.bf16 %v335_v51, %v332_v50  ;;  %v4110_v60 = vpack.c.bf16 %v342_v54, %v339_v52  ;;  %v338_v61 = vld [vmem:[%s4738_s2 + $0x120] sm:$0xff]  ;;  %v341_v62 = vld [vmem:[%s4738_s2 + $0x138] sm:$0xff] }
  0x3b   :  { %79 = vst [vmem:[#allocation2 + $0x8] sm:$0x3] %v71_v63  ;;  %80 = vst [vmem:[#allocation2 + $0xa] sm:$0x3] %v72_v0  ;;  %v345_v63 = vld [vmem:[%s4738_s2 + $0x158] sm:$0xff]  ;;  %v348_v0 = vld [vmem:[%s4738_s2 + $0x170] sm:$0xff]  ;;  %v4135_v37 = vpack.c.bf16 %v341_v62, %v338_v61 }
  0x3c   :  { %81 = vst [vmem:[#allocation2 + $0xc] sm:$0x3] %v73_v1  ;;  %82 = vst [vmem:[#allocation2 + $0xe] sm:$0x3] %v74_v2  ;;  %v4125_v1 = vpack.c.bf16 %v337_v57, %v334_v56  ;;  %v340_v2 = vld [vmem:[%s4738_s2 + $0x130] sm:$0xff]  ;;  %v4138_v38 = vpack.c.bf16 %v348_v0, %v345_v63  ;;  %v347_v43 = vld [vmem:[%s4738_s2 + $0x168] sm:$0xff] }
  0x3d   :  { %v344_v39 = vld [vmem:[%s4738_s2 + $0x150] sm:$0xff]  ;;  %v4147_v47 = vpack.c.bf16 %v343_v35, %v340_v2 }
  0x41   :  { %v83_v7 = vld [vmem:[#allocation2] sm:$0xff] }
  0x42   :  { %215 = vmatmul.mubr.f32.vlgmr.msra.gmra.mrb[0].mxu0 %v83_v7  ;;  %2520 = vmatprep.mubr.f32.mxu1 %v83_v7  ;;  %v4157_v7 = vpack.c.bf16 %v347_v43, %v344_v39 }
  0x43   :  { %v84_v11 = vld [vmem:[#allocation2 + $0x8] sm:$0xff]  ;;  %3010 = vmatpush1.bf16.msra.mxu0 %v3966_v59  ;;  %220 = vmatprep.mubr.f32.mxu0 %v3678_v3 }
  0x44   :  { %3012 = vmatprep.subr.bf16.mxu0 %v3968_v4  ;;  %2521 = vmatmul.mubr.f32.vlgmr.msra.gmra.mrb[0].mxu1 %v84_v11 }
  0x45   :  { %3041 = vmatpush3.bf16.msra.mxu1 %v3982_v10  ;;  %2555 = vmatprep.mubr.msk.f32.mxu1 %vm3680_vm3, %v3678_v3 }
  0x46   :  { %221 = vmatmul.mubr.f32.gmra.mrb[2].mxu0 %v84_v11  ;;  %3042 = vmatprep.subr.bf16.mxu1 %v3679_v53  ;;  %v136_v11 = vshrl.u32 %v135_v9, 7 }
  0x47   :  { %3014 = vmatpush1.bf16.msra.mxu0 %v3991_v14  ;;  %431 = vmatprep.mubr.f32.mxu0 %v3678_v3 }
  0x48   :  { %3016 = vmatprep.subr.bf16.mxu0 %v3995_v15  ;;  %v145_v12 = vsub.s32 2, %v136_v11  ;;  %v137_v16 = vsub.s32 0, %v136_v11  ;;  %v141_v19 = vsub.s32 1, %v136_v11 }
  0x49   :  { %3044 = vmatpush3.bf16.msra.mxu1 %v4010_v20 }
  0x4a   :  { %3045 = vmatprep.subr.bf16.mxu1 %v3679_v53  ;;  %v146_v17 = vrot.slane %v133_v13, %v145_v12  ;;  %v138_v25 = vrot.slane %v133_v13, %v137_v16  ;;  %v142_v28 = vrot.slane %v133_v13, %v141_v19  ;;  %v4217_v41 = vrot.slane %v350_v40, %v137_v16 }
  0x4b   :  { %3018 = vmatpush1.bf16.msra.mxu0 %v4022_v23  ;;  %v4219_v45 = vrot.slane %v350_v40, %v141_v19  ;;  %v4229_v43 = vrot.slane %v350_v40, %v145_v12 }
  0x4c   :  { %3020 = vmatprep.subr.bf16.mxu0 %v4026_v24 }
  0x4d   :  { %3047 = vmatpush3.bf16.msra.mxu1 %v4041_v29 }
  0x4e   :  { %3048 = vmatprep.subr.bf16.mxu1 %v3679_v53 }
  0x4f   :  { %3022 = vmatpush1.bf16.msra.mxu0 %v4051_v32 }
  0x50   :  { %3024 = vmatprep.subr.bf16.mxu0 %v4054_v33 }
  0x51   :  { %3050 = vmatpush3.bf16.msra.mxu1 %v4069_v44 }
  0x52   :  { %3051 = vmatprep.subr.bf16.mxu1 %v3679_v53 }
  0x53   :  { %3026 = vmatpush1.bf16.msra.mxu0 %v4079_v48 }
  0x54   :  { %3028 = vmatprep.subr.bf16.mxu0 %v4082_v49 }
  0x55   :  { %3053 = vmatpush3.bf16.msra.mxu1 %v4097_v55 }
  0x56   :  { %3054 = vmatprep.subr.bf16.mxu1 %v3679_v53 }
  0x57   :  { %3030 = vmatpush1.bf16.msra.mxu0 %v4107_v58 }
  0x58   :  { %3032 = vmatprep.subr.bf16.mxu0 %v4110_v60 }
  0x59   :  { %3056 = vmatpush3.bf16.msra.mxu1 %v4125_v1 }
  0x5a   :  { %3057 = vmatprep.subr.bf16.mxu1 %v3679_v53 }
  0x5b   :  { %3034 = vmatpush1.bf16.msra.mxu0 %v4135_v37 }
  0x5c   :  { %3036 = vmatprep.subr.bf16.mxu0 %v4138_v38 }
  0x5d   :  { %3059 = vmatpush3.bf16.msra.mxu1 %v4147_v47 }
  0x5e   :  { %3060 = vmatprep.subr.bf16.mxu1 %v3679_v53 }
  0x5f   :  { %3038 = vmatpush1.bf16.msra.mxu0 %v4157_v7 }
  0x60   :  { %3064 = vmatprep.subr.bf16.mxu0 %v3930_v42 }
  0x61   :  { %3062 = vmatpush3.bf16.msra.mxu1 %v4161_v8 }
  0x62   :  { %432 = vmatmul.mubr.f32.vlgmr.msra.gmra.mrb[4].mxu0 %v3678_v3  ;;  %3095 = vmatprep.subr.bf16.mxu1 %v3679_v53 }
  0x63   :  { %3066 = vmatpush1.bf16.msra.mxu0 %v3966_v59  ;;  %594 = vmatprep.mubr.f32.mxu0 %v3678_v3 }
  0x64   :  { %2556 = vmatmul.mubr.f32.vlgmr.msra.gmra.mrb[2].mxu1 %v3678_v3  ;;  %3068 = vmatprep.subr.bf16.mxu0 %v3968_v4 }
  0x65   :  { %3097 = vmatpush3.bf16.msra.mxu1 %v3982_v10  ;;  %2590 = vmatprep.mubr.msk.f32.mxu1 %vm3680_vm3, %v3678_v3 }
  0x66   :  { %3098 = vmatprep.subr.bf16.mxu1 %v3679_v53 }
  0x67   :  { %3070 = vmatpush1.bf16.msra.mxu0 %v3991_v14 }
  0x68   :  { %3072 = vmatprep.subr.bf16.mxu0 %v3995_v15 }
  0x69   :  { %3100 = vmatpush3.bf16.msra.mxu1 %v4010_v20 }
  0x6a   :  { %3101 = vmatprep.subr.bf16.mxu1 %v3679_v53 }
  0x6b   :  { %3074 = vmatpush1.bf16.msra.mxu0 %v4022_v23 }
  0x6c   :  { %3076 = vmatprep.subr.bf16.mxu0 %v4026_v24 }
  0x6d   :  { %3103 = vmatpush3.bf16.msra.mxu1 %v4041_v29 }
  0x6e   :  { %3104 = vmatprep.subr.bf16.mxu1 %v3679_v53 }
  0x6f   :  { %3078 = vmatpush1.bf16.msra.mxu0 %v4051_v32 }
  0x70   :  { %3080 = vmatprep.subr.bf16.mxu0 %v4054_v33 }
  0x71   :  { %3106 = vmatpush3.bf16.msra.mxu1 %v4069_v44 }
  0x72   :  { %3107 = vmatprep.subr.bf16.mxu1 %v3679_v53 }
  0x73   :  { %3082 = vmatpush1.bf16.msra.mxu0 %v4079_v48 }
  0x74   :  { %3084 = vmatprep.subr.bf16.mxu0 %v4082_v49 }
  0x75   :  { %3109 = vmatpush3.bf16.msra.mxu1 %v4097_v55 }
  0x76   :  { %3110 = vmatprep.subr.bf16.mxu1 %v3679_v53 }
  0x77   :  { %3086 = vmatpush1.bf16.msra.mxu0 %v4107_v58 }
  0x78   :  { %3088 = vmatprep.subr.bf16.mxu0 %v4110_v60 }
  0x79   :  { %3112 = vmatpush3.bf16.msra.mxu1 %v4125_v1 }
  0x7a   :  { %3113 = vmatprep.subr.bf16.mxu1 %v3679_v53 }
  0x7b   :  { %3090 = vmatpush1.bf16.msra.mxu0 %v4135_v37 }
  0x7c   :  { %3092 = vmatprep.subr.bf16.mxu0 %v4138_v38 }
  0x7d   :  { %3115 = vmatpush3.bf16.msra.mxu1 %v4147_v47 }
  0x7e   :  { %3116 = vmatprep.subr.bf16.mxu1 %v3679_v53 }
  0x7f   :  { %3094 = vmatpush1.bf16.msra.mxu0 %v4157_v7 }
  0x80   :  { %3120 = vmatprep.subr.bf16.mxu0 %v3930_v42 }
  0x81   :  { %3118 = vmatpush3.bf16.msra.mxu1 %v4161_v8 }
  0x82   :  { %3151 = vmatprep.subr.bf16.mxu1 %v3679_v53 }
 0x115   :  { %v216_v18 = vpop.f32.mrb[0].mxu0 }
 0x116   :  { %v218_v21 = vpop.f32.mrb[1].mxu0  ;;  %v4221_v50 = vadd.f32 %v216_v18, %v138_v25 }
 0x117   :  { %v2522_v22 = vpop.f32.mrb[0].mxu1  ;;  %v4226_v62 = vadd.f32 %v218_v21, %v142_v28 }
 0x118   :  { %v4208_v26 = vadd.f32 %v2522_v22, %v146_v17  ;;  %v293_v27 = vpop.f32.mrb[1].mxu1 }
 0x119   :  { %v222_v30 = vpop.f32.mrb[2].mxu0  ;;  %v4232_v13 = vadd.f32 %v293_v27, %v146_v17 }
 0x11a   :  { %v4210_v31 = vadd.f32 %v222_v30, %v138_v25  ;;  %v224_v34 = vpop.f32.mrb[3].mxu0 }
 0x11b   :  { %v4212_v36 = vadd.f32 %v224_v34, %v142_v28 }
 0x135   :  { %v433_v46 = vpop.f32.mrb[4].mxu0 }
 0x136   :  { %v434_v51 = vadd.f32 %v433_v46, %v4217_v41  ;;  %v435_v52 = vpop.f32.mrb[5].mxu0 }
 0x137   :  { %v436_v54 = vadd.f32 %v435_v52, %v4219_v45  ;;  %v504_v56 = vpop.f32.mrb[2].mxu1 }
 0x138   :  { %v508_v57 = vadd.f32 %v434_v51, %v4221_v50  ;;  %v2557_v61 = vpop.f32.mrb[3].mxu1  ;;  %v505_v9 = vadd.f32 %v504_v56, %v4229_v43 }
 0x139   :  { %v515_v0 = vadd.f32 %v436_v54, %v4226_v62 }
 0x13a   :  { %v2197_v63 = vmul.f32 -1.442695, %v508_v57 }
 0x13b   :  { %v2198_v2 = vmul.f32 -1.442695, %v515_v0 }
 0x13c   :  { %3590 = vpow2.f32 %v2197_v63 }
 0x13d   :  { %3592 = vpow2.f32 %v2198_v2 }
 0x146   :  { %v3591_v35 = vpop.eup %3590 }
 0x147   :  { %v512_v39 = vadd.f32 1.0, %v3591_v35  ;;  %v3593_v5 = vpop.eup %3592 }
 0x148   :  { %v519_v6 = vadd.f32 1.0, %v3593_v5 }
 0x149   :  { %3594 = vrcp.f32 %v512_v39 }
 0x14a   :  { %3596 = vrcp.f32 %v519_v6 }
 0x153   :  { %v3595_v11 = vpop.eup %3594 }
 0x154   :  { %v522_v16 = vmul.f32 %v3595_v11, %v505_v9  ;;  %v3597_v19 = vpop.eup %3596 }
 0x155   :  { %v525_v21 = vsub.f32 1.0, %v3597_v19  ;;  %v527_v28 = vmul.f32 0.0, %v3597_v19 }
 0x156   :  { %v523_v18 = vadd.f32 %v522_v16, %v4232_v13 }
 0x158   :  { %3598 = vtanh.f32 %v523_v18 }
 0x162   :  { %v3599_v22 = vpop.eup %3598 }
 0x163   :  { %v526_v25 = vmul.f32 %v3599_v22, %v525_v21 }
 0x165   :  { %v4235_v30 = vadd.f32 %v527_v28, %v526_v25 }
 0x167   :  { %529 = vst [vmem:[#allocation3] sm:$0x3] %v4235_v30  ;;  %595 = vmatmul.mubr.f32.vlgmr.msra.gmra.mrb[6].mxu0 %v4235_v30  ;;  %2591 = vmatmul.mubr.f32.vlgmr.msra.gmra.mrb[4].mxu1 %v4235_v30  ;;  %v700_v9 = vrot.slane %v4235_v30, 6 }
 0x168   :  { %3122 = vmatpush1.bf16.msra.mxu0 %v3966_v59  ;;  %3153 = vmatpush3.bf16.msra.mxu1 %v3982_v10 }
 0x169   :  { %3124 = vmatprep.subr.bf16.mxu0 %v3968_v4  ;;  %3154 = vmatprep.subr.bf16.mxu1 %v3679_v53 }
 0x16a   :  { %772 = vmatprep.mubr.f32.mxu0 %v3678_v3  ;;  %2625 = vmatprep.mubr.msk.f32.mxu1 %vm3680_vm3, %v3678_v3 }
 0x16c   :  { %3126 = vmatpush1.bf16.msra.mxu0 %v3991_v14  ;;  %3156 = vmatpush3.bf16.msra.mxu1 %v4010_v20 }
 0x16d   :  { %3128 = vmatprep.subr.bf16.mxu0 %v3995_v15  ;;  %3157 = vmatprep.subr.bf16.mxu1 %v3679_v53 }
 0x170   :  { %3130 = vmatpush1.bf16.msra.mxu0 %v4022_v23  ;;  %3159 = vmatpush3.bf16.msra.mxu1 %v4041_v29 }
 0x171   :  { %3132 = vmatprep.subr.bf16.mxu0 %v4026_v24  ;;  %3160 = vmatprep.subr.bf16.mxu1 %v3679_v53 }
 0x174   :  { %3134 = vmatpush1.bf16.msra.mxu0 %v4051_v32  ;;  %3162 = vmatpush3.bf16.msra.mxu1 %v4069_v44 }
 0x175   :  { %3136 = vmatprep.subr.bf16.mxu0 %v4054_v33  ;;  %3163 = vmatprep.subr.bf16.mxu1 %v3679_v53 }
 0x178   :  { %3138 = vmatpush1.bf16.msra.mxu0 %v4079_v48  ;;  %3165 = vmatpush3.bf16.msra.mxu1 %v4097_v55 }
 0x179   :  { %3140 = vmatprep.subr.bf16.mxu0 %v4082_v49  ;;  %3166 = vmatprep.subr.bf16.mxu1 %v3679_v53 }
 0x17c   :  { %3142 = vmatpush1.bf16.msra.mxu0 %v4107_v58  ;;  %3168 = vmatpush3.bf16.msra.mxu1 %v4125_v1 }
 0x17d   :  { %3144 = vmatprep.subr.bf16.mxu0 %v4110_v60  ;;  %3169 = vmatprep.subr.bf16.mxu1 %v3679_v53 }
 0x180   :  { %3146 = vmatpush1.bf16.msra.mxu0 %v4135_v37  ;;  %3171 = vmatpush3.bf16.msra.mxu1 %v4147_v47 }
 0x181   :  { %3148 = vmatprep.subr.bf16.mxu0 %v4138_v38  ;;  %3172 = vmatprep.subr.bf16.mxu1 %v3679_v53 }
 0x184   :  { %3150 = vmatpush1.bf16.msra.mxu0 %v4157_v7  ;;  %3174 = vmatpush3.bf16.msra.mxu1 %v4161_v8 }
 0x185   :  { %3176 = vmatprep.subr.bf16.mxu0 %v3930_v42  ;;  %3207 = vmatprep.subr.bf16.mxu1 %v3679_v53 }
 0x23a   :  { %v596_v12 = vpop.f32.mrb[6].mxu0  ;;  %v667_v17 = vpop.f32.mrb[4].mxu1 }
 0x23b   :  { %v597_v27 = vadd.f32 %v596_v12, %v4217_v41  ;;  %v598_v34 = vpop.f32.mrb[7].mxu0  ;;  %v2592_v40 = vpop.f32.mrb[5].mxu1  ;;  %v668_v39 = vadd.f32 %v667_v17, %v4229_v43 }
 0x23c   :  { %v599_v46 = vadd.f32 %v598_v34, %v4219_v45 }
 0x23d   :  { %v672_v51 = vrot.slane %v597_v27, 6  ;;  %v692_v5 = vrot.slane %v668_v39, 6 }
 0x23e   :  { %v682_v52 = vrot.slane %v599_v46, 6 }
 0x23f   :  { %v674_v54 = vadd.f32 %v672_v51, %v4221_v50 }
 0x240   :  { %v684_v56 = vadd.f32 %v682_v52, %v4226_v62 }
 0x241   :  { %v2199_v57 = vmul.f32 -1.442695, %v674_v54 }
 0x242   :  { %v2200_v61 = vmul.f32 -1.442695, %v684_v56 }
 0x243   :  { %3600 = vpow2.f32 %v2199_v57 }
 0x244   :  { %3602 = vpow2.f32 %v2200_v61 }
 0x24d   :  { %v3601_v63 = vpop.eup %3600 }
 0x24e   :  { %v3603_v0 = vpop.eup %3602  ;;  %v678_v2 = vadd.f32 1.0, %v3601_v63 }
 0x24f   :  { %v688_v35 = vadd.f32 1.0, %v3603_v0 }
 0x250   :  { %3604 = vrcp.f32 %v678_v2 }
 0x251   :  { %3606 = vrcp.f32 %v688_v35 }
 0x25a   :  { %v3605_v6 = vpop.eup %3604 }
 0x25b   :  { %v3607_v11 = vpop.eup %3606  ;;  %v694_v16 = vmul.f32 %v3605_v6, %v692_v5 }
 0x25c   :  { %v702_v18 = vmul.f32 %v3607_v11, %v700_v9  ;;  %v697_v21 = vsub.f32 1.0, %v3607_v11 }
 0x25d   :  { %v695_v19 = vadd.f32 %v694_v16, %v4232_v13 }
 0x25f   :  { %3608 = vtanh.f32 %v695_v19 }
 0x269   :  { %v3609_v22 = vpop.eup %3608 }
 0x26a   :  { %v698_v25 = vmul.f32 %v3609_v22, %v697_v21 }
 0x26c   :  { %v4282_v28 = vadd.f32 %v702_v18, %v698_v25 }
 0x26e   :  { %704 = vst [vmem:[#allocation3] sm:$0xc] %v4282_v28  ;;  %v706_v12 = vrot.slane %v4282_v28, 2  ;;  %v877_v9 = vrot.slane %v4282_v28, 6 }
 0x270   :  { %773 = vmatmul.mubr.f32.vlgmr.msra.gmra.mrb[8].mxu0 %v706_v12  ;;  %2626 = vmatmul.mubr.f32.vlgmr.msra.gmra.mrb[6].mxu1 %v706_v12 }
 0x271   :  { %3178 = vmatpush1.bf16.msra.mxu0 %v3966_v59  ;;  %3209 = vmatpush3.bf16.msra.mxu1 %v3982_v10 }
 0x272   :  { %3180 = vmatprep.subr.bf16.mxu0 %v3968_v4  ;;  %3210 = vmatprep.subr.bf16.mxu1 %v3679_v53 }
 0x273   :  { %949 = vmatprep.mubr.f32.mxu0 %v3678_v3  ;;  %2660 = vmatprep.mubr.msk.f32.mxu1 %vm3680_vm3, %v3678_v3 }
 0x275   :  { %3182 = vmatpush1.bf16.msra.mxu0 %v3991_v14  ;;  %3212 = vmatpush3.bf16.msra.mxu1 %v4010_v20 }
 0x276   :  { %3184 = vmatprep.subr.bf16.mxu0 %v3995_v15  ;;  %3213 = vmatprep.subr.bf16.mxu1 %v3679_v53 }
 0x279   :  { %3186 = vmatpush1.bf16.msra.mxu0 %v4022_v23  ;;  %3215 = vmatpush3.bf16.msra.mxu1 %v4041_v29 }
 0x27a   :  { %3188 = vmatprep.subr.bf16.mxu0 %v4026_v24  ;;  %3216 = vmatprep.subr.bf16.mxu1 %v3679_v53 }
 0x27d   :  { %3190 = vmatpush1.bf16.msra.mxu0 %v4051_v32  ;;  %3218 = vmatpush3.bf16.msra.mxu1 %v4069_v44 }
 0x27e   :  { %3192 = vmatprep.subr.bf16.mxu0 %v4054_v33  ;;  %3219 = vmatprep.subr.bf16.mxu1 %v3679_v53 }
 0x281   :  { %3194 = vmatpush1.bf16.msra.mxu0 %v4079_v48  ;;  %3221 = vmatpush3.bf16.msra.mxu1 %v4097_v55 }
 0x282   :  { %3196 = vmatprep.subr.bf16.mxu0 %v4082_v49  ;;  %3222 = vmatprep.subr.bf16.mxu1 %v3679_v53 }
 0x285   :  { %3198 = vmatpush1.bf16.msra.mxu0 %v4107_v58  ;;  %3224 = vmatpush3.bf16.msra.mxu1 %v4125_v1 }
 0x286   :  { %3200 = vmatprep.subr.bf16.mxu0 %v4110_v60  ;;  %3225 = vmatprep.subr.bf16.mxu1 %v3679_v53 }
 0x289   :  { %3202 = vmatpush1.bf16.msra.mxu0 %v4135_v37  ;;  %3227 = vmatpush3.bf16.msra.mxu1 %v4147_v47 }
 0x28a   :  { %3204 = vmatprep.subr.bf16.mxu0 %v4138_v38  ;;  %3228 = vmatprep.subr.bf16.mxu1 %v3679_v53 }
 0x28d   :  { %3206 = vmatpush1.bf16.msra.mxu0 %v4157_v7  ;;  %3230 = vmatpush3.bf16.msra.mxu1 %v4161_v8 }
 0x28e   :  { %3232 = vmatprep.subr.bf16.mxu0 %v3930_v42  ;;  %3263 = vmatprep.subr.bf16.mxu1 %v3679_v53 }
 0x343   :  { %v774_v30 = vpop.f32.mrb[8].mxu0  ;;  %v845_v17 = vpop.f32.mrb[6].mxu1 }
 0x344   :  { %v775_v27 = vadd.f32 %v774_v30, %v4217_v41  ;;  %v776_v34 = vpop.f32.mrb[9].mxu0  ;;  %v2627_v40 = vpop.f32.mrb[7].mxu1  ;;  %v846_v39 = vadd.f32 %v845_v17, %v4229_v43 }
 0x345   :  { %v777_v46 = vadd.f32 %v776_v34, %v4219_v45 }
 0x346   :  { %v850_v51 = vrot.slane %v775_v27, 4  ;;  %v870_v5 = vrot.slane %v846_v39, 4 }
 0x347   :  { %v860_v52 = vrot.slane %v777_v46, 4 }
 0x348   :  { %v852_v54 = vadd.f32 %v850_v51, %v4221_v50 }
 0x349   :  { %v862_v56 = vadd.f32 %v860_v52, %v4226_v62 }
 0x34a   :  { %v2201_v57 = vmul.f32 -1.442695, %v852_v54 }
 0x34b   :  { %v2202_v61 = vmul.f32 -1.442695, %v862_v56 }
 0x34c   :  { %3610 = vpow2.f32 %v2201_v57 }
 0x34d   :  { %3612 = vpow2.f32 %v2202_v61 }
 0x356   :  { %v3611_v63 = vpop.eup %3610 }
 0x357   :  { %v3613_v0 = vpop.eup %3612  ;;  %v856_v2 = vadd.f32 1.0, %v3611_v63 }
 0x358   :  { %v866_v35 = vadd.f32 1.0, %v3613_v0 }
 0x359   :  { %3614 = vrcp.f32 %v856_v2 }
 0x35a   :  { %3616 = vrcp.f32 %v866_v35 }
 0x363   :  { %v3615_v6 = vpop.eup %3614 }
 0x364   :  { %v3617_v11 = vpop.eup %3616  ;;  %v872_v16 = vmul.f32 %v3615_v6, %v870_v5 }
 0x365   :  { %v879_v18 = vmul.f32 %v3617_v11, %v877_v9  ;;  %v875_v21 = vsub.f32 1.0, %v3617_v11 }
 0x366   :  { %v873_v19 = vadd.f32 %v872_v16, %v4232_v13 }
 0x368   :  { %3618 = vtanh.f32 %v873_v19 }
 0x372   :  { %v3619_v22 = vpop.eup %3618 }
 0x373   :  { %v876_v25 = vmul.f32 %v3619_v22, %v875_v21 }
 0x375   :  { %v4328_v12 = vadd.f32 %v879_v18, %v876_v25 }
 0x377   :  { %881 = vst [vmem:[#allocation3] sm:$0x30] %v4328_v12  ;;  %v883_v30 = vrot.slane %v4328_v12, 4  ;;  %v1054_v9 = vrot.slane %v4328_v12, 6 }
 0x379   :  { %950 = vmatmul.mubr.f32.vlgmr.msra.gmra.mrb[10].mxu0 %v883_v30  ;;  %2661 = vmatmul.mubr.f32.vlgmr.msra.gmra.mrb[8].mxu1 %v883_v30 }
 0x37a   :  { %3234 = vmatpush1.bf16.msra.mxu0 %v3966_v59  ;;  %3265 = vmatpush3.bf16.msra.mxu1 %v3982_v10 }
 0x37b   :  { %3236 = vmatprep.subr.bf16.mxu0 %v3968_v4  ;;  %3266 = vmatprep.subr.bf16.mxu1 %v3679_v53 }
 0x37c   :  { %1126 = vmatprep.mubr.f32.mxu0 %v3678_v3  ;;  %2695 = vmatprep.mubr.msk.f32.mxu1 %vm3680_vm3, %v3678_v3 }
 0x37e   :  { %3238 = vmatpush1.bf16.msra.mxu0 %v3991_v14  ;;  %3268 = vmatpush3.bf16.msra.mxu1 %v4010_v20 }
 0x37f   :  { %3240 = vmatprep.subr.bf16.mxu0 %v3995_v15  ;;  %3269 = vmatprep.subr.bf16.mxu1 %v3679_v53 }
 0x382   :  { %3242 = vmatpush1.bf16.msra.mxu0 %v4022_v23  ;;  %3271 = vmatpush3.bf16.msra.mxu1 %v4041_v29 }
 0x383   :  { %3244 = vmatprep.subr.bf16.mxu0 %v4026_v24  ;;  %3272 = vmatprep.subr.bf16.mxu1 %v3679_v53 }
 0x386   :  { %3246 = vmatpush1.bf16.msra.mxu0 %v4051_v32  ;;  %3274 = vmatpush3.bf16.msra.mxu1 %v4069_v44 }
 0x387   :  { %3248 = vmatprep.subr.bf16.mxu0 %v4054_v33  ;;  %3275 = vmatprep.subr.bf16.mxu1 %v3679_v53 }
 0x38a   :  { %3250 = vmatpush1.bf16.msra.mxu0 %v4079_v48  ;;  %3277 = vmatpush3.bf16.msra.mxu1 %v4097_v55 }
 0x38b   :  { %3252 = vmatprep.subr.bf16.mxu0 %v4082_v49  ;;  %3278 = vmatprep.subr.bf16.mxu1 %v3679_v53 }
 0x38e   :  { %3254 = vmatpush1.bf16.msra.mxu0 %v4107_v58  ;;  %3280 = vmatpush3.bf16.msra.mxu1 %v4125_v1 }
 0x38f   :  { %3256 = vmatprep.subr.bf16.mxu0 %v4110_v60  ;;  %3281 = vmatprep.subr.bf16.mxu1 %v3679_v53 }
 0x392   :  { %3258 = vmatpush1.bf16.msra.mxu0 %v4135_v37  ;;  %3283 = vmatpush3.bf16.msra.mxu1 %v4147_v47 }
 0x393   :  { %3260 = vmatprep.subr.bf16.mxu0 %v4138_v38  ;;  %3284 = vmatprep.subr.bf16.mxu1 %v3679_v53 }
 0x396   :  { %3262 = vmatpush1.bf16.msra.mxu0 %v4157_v7  ;;  %3286 = vmatpush3.bf16.msra.mxu1 %v4161_v8 }
 0x397   :  { %3288 = vmatprep.subr.bf16.mxu0 %v3930_v42  ;;  %3319 = vmatprep.subr.bf16.mxu1 %v3679_v53 }
 0x44c   :  { %v951_v28 = vpop.f32.mrb[10].mxu0  ;;  %v1022_v17 = vpop.f32.mrb[8].mxu1 }
 0x44d   :  { %v952_v27 = vadd.f32 %v951_v28, %v4217_v41  ;;  %v953_v34 = vpop.f32.mrb[11].mxu0  ;;  %v2662_v40 = vpop.f32.mrb[9].mxu1  ;;  %v1023_v39 = vadd.f32 %v1022_v17, %v4229_v43 }
 0x44e   :  { %v954_v46 = vadd.f32 %v953_v34, %v4219_v45 }
 0x44f   :  { %v1027_v51 = vrot.slane %v952_v27, 2  ;;  %v1047_v5 = vrot.slane %v1023_v39, 2 }
 0x450   :  { %v1037_v52 = vrot.slane %v954_v46, 2 }
 0x451   :  { %v1029_v54 = vadd.f32 %v1027_v51, %v4221_v50 }
 0x452   :  { %v1039_v56 = vadd.f32 %v1037_v52, %v4226_v62 }
 0x453   :  { %v2203_v57 = vmul.f32 -1.442695, %v1029_v54 }
 0x454   :  { %v2204_v61 = vmul.f32 -1.442695, %v1039_v56 }
 0x455   :  { %3620 = vpow2.f32 %v2203_v57 }
 0x456   :  { %3622 = vpow2.f32 %v2204_v61 }
 0x45f   :  { %v3621_v63 = vpop.eup %3620 }
 0x460   :  { %v3623_v0 = vpop.eup %3622  ;;  %v1033_v2 = vadd.f32 1.0, %v3621_v63 }
 0x461   :  { %v1043_v35 = vadd.f32 1.0, %v3623_v0 }
 0x462   :  { %3624 = vrcp.f32 %v1033_v2 }
 0x463   :  { %3626 = vrcp.f32 %v1043_v35 }
 0x46c   :  { %v3625_v6 = vpop.eup %3624 }
 0x46d   :  { %v3627_v11 = vpop.eup %3626  ;;  %v1049_v50 = vmul.f32 %v3625_v6, %v1047_v5 }
 0x46e   :  { %v1056_v16 = vmul.f32 %v3627_v11, %v1054_v9  ;;  %v1052_v18 = vsub.f32 1.0, %v3627_v11 }
 0x46f   :  { %v1050_v62 = vadd.f32 %v1049_v50, %v4232_v13 }
 0x471   :  { %3628 = vtanh.f32 %v1050_v62 }
 0x47b   :  { %v3629_v19 = vpop.eup %3628 }
 0x47c   :  { %v1053_v21 = vmul.f32 %v3629_v19, %v1052_v18 }
 0x47e   :  { %v1057_v22 = vadd.f32 %v1056_v16, %v1053_v21 }
 0x480   :  { %1058 = vst [vmem:[#allocation3] sm:$0xc0] %v1057_v22  ;;  %v4374_v25 = vrot.slane %v1057_v22, 6 }
 0x482   :  { %1127 = vmatmul.mubr.f32.vlgmr.msra.gmra.mrb[12].mxu0 %v4374_v25  ;;  %2696 = vmatmul.mubr.f32.vlgmr.msra.gmra.mrb[10].mxu1 %v4374_v25 }
 0x483   :  { %3290 = vmatpush1.bf16.msra.mxu0 %v3966_v59  ;;  %3321 = vmatpush3.bf16.msra.mxu1 %v3982_v10 }
 0x484   :  { %3292 = vmatprep.subr.bf16.mxu0 %v3968_v4  ;;  %3322 = vmatprep.subr.bf16.mxu1 %v3679_v53 }
 0x485   :  { %1289 = vmatprep.mubr.f32.mxu0 %v3678_v3  ;;  %2730 = vmatprep.mubr.msk.f32.mxu1 %vm3680_vm3, %v3678_v3 }
 0x487   :  { %3294 = vmatpush1.bf16.msra.mxu0 %v3991_v14  ;;  %3324 = vmatpush3.bf16.msra.mxu1 %v4010_v20 }
 0x488   :  { %3296 = vmatprep.subr.bf16.mxu0 %v3995_v15  ;;  %3325 = vmatprep.subr.bf16.mxu1 %v3679_v53 }
 0x48b   :  { %3298 = vmatpush1.bf16.msra.mxu0 %v4022_v23  ;;  %3327 = vmatpush3.bf16.msra.mxu1 %v4041_v29 }
 0x48c   :  { %3300 = vmatprep.subr.bf16.mxu0 %v4026_v24  ;;  %3328 = vmatprep.subr.bf16.mxu1 %v3679_v53 }
 0x48f   :  { %3302 = vmatpush1.bf16.msra.mxu0 %v4051_v32  ;;  %3330 = vmatpush3.bf16.msra.mxu1 %v4069_v44 }
 0x490   :  { %3304 = vmatprep.subr.bf16.mxu0 %v4054_v33  ;;  %3331 = vmatprep.subr.bf16.mxu1 %v3679_v53 }
 0x493   :  { %3306 = vmatpush1.bf16.msra.mxu0 %v4079_v48  ;;  %3333 = vmatpush3.bf16.msra.mxu1 %v4097_v55 }
 0x494   :  { %3308 = vmatprep.subr.bf16.mxu0 %v4082_v49  ;;  %3334 = vmatprep.subr.bf16.mxu1 %v3679_v53 }
 0x497   :  { %3310 = vmatpush1.bf16.msra.mxu0 %v4107_v58  ;;  %3336 = vmatpush3.bf16.msra.mxu1 %v4125_v1 }
 0x498   :  { %3312 = vmatprep.subr.bf16.mxu0 %v4110_v60  ;;  %3337 = vmatprep.subr.bf16.mxu1 %v3679_v53 }
 0x49b   :  { %3314 = vmatpush1.bf16.msra.mxu0 %v4135_v37  ;;  %3339 = vmatpush3.bf16.msra.mxu1 %v4147_v47 }
 0x49c   :  { %3316 = vmatprep.subr.bf16.mxu0 %v4138_v38  ;;  %3340 = vmatprep.subr.bf16.mxu1 %v3679_v53 }
 0x49f   :  { %3318 = vmatpush1.bf16.msra.mxu0 %v4157_v7  ;;  %3342 = vmatpush3.bf16.msra.mxu1 %v4161_v8 }
 0x4a0   :  { %3344 = vmatprep.subr.bf16.mxu0 %v3930_v42  ;;  %3375 = vmatprep.subr.bf16.mxu1 %v3679_v53 }
 0x555   :  { %v1128_v13 = vpop.f32.mrb[12].mxu0  ;;  %v1199_v12 = vpop.f32.mrb[10].mxu1 }
 0x556   :  { %v1129_v30 = vadd.f32 %v1128_v13, %v4217_v41  ;;  %v1130_v28 = vpop.f32.mrb[13].mxu0  ;;  %v2697_v17 = vpop.f32.mrb[11].mxu1  ;;  %v1200_v61 = vadd.f32 %v1199_v12, %v4229_v43 }
 0x557   :  { %v1131_v27 = vadd.f32 %v1130_v28, %v4219_v45 }
 0x558   :  { %v1203_v34 = vadd.f32 %v1129_v30, %v4210_v31 }
 0x559   :  { %v1210_v46 = vadd.f32 %v1131_v27, %v4212_v36 }
 0x55a   :  { %v2205_v40 = vmul.f32 -1.442695, %v1203_v34 }
 0x55b   :  { %v2206_v51 = vmul.f32 -1.442695, %v1210_v46 }
 0x55c   :  { %3630 = vpow2.f32 %v2205_v40 }
 0x55d   :  { %3632 = vpow2.f32 %v2206_v51 }
 0x566   :  { %v3631_v52 = vpop.eup %3630 }
 0x567   :  { %v1207_v54 = vadd.f32 1.0, %v3631_v52  ;;  %v3633_v56 = vpop.eup %3632 }
 0x568   :  { %v1214_v57 = vadd.f32 1.0, %v3633_v56 }
 0x569   :  { %3634 = vrcp.f32 %v1207_v54 }
 0x56a   :  { %3636 = vrcp.f32 %v1214_v57 }
 0x573   :  { %v3635_v63 = vpop.eup %3634 }
 0x574   :  { %v1217_v0 = vmul.f32 %v3635_v63, %v1200_v61  ;;  %v3637_v35 = vpop.eup %3636 }
 0x575   :  { %v1220_v39 = vsub.f32 1.0, %v3637_v35  ;;  %v1222_v9 = vmul.f32 %v3637_v35, %v4374_v25 }
 0x576   :  { %v1218_v2 = vadd.f32 %v1217_v0, %v4208_v26 }
 0x578   :  { %3638 = vtanh.f32 %v1218_v2 }
 0x582   :  { %v3639_v5 = vpop.eup %3638 }
 0x583   :  { %v1221_v6 = vmul.f32 %v3639_v5, %v1220_v39 }
 0x585   :  { %v4420_v11 = vadd.f32 %v1222_v9, %v1221_v6 }
 0x587   :  { %1224 = vst [vmem:[#allocation3 + $0x8] sm:$0x3] %v4420_v11  ;;  %1290 = vmatmul.mubr.f32.vlgmr.msra.gmra.mrb[14].mxu0 %v4420_v11  ;;  %2731 = vmatmul.mubr.f32.vlgmr.msra.gmra.mrb[12].mxu1 %v4420_v11  ;;  %v1395_v52 = vrot.slane %v4420_v11, 6 }
 0x588   :  { %3346 = vmatpush1.bf16.msra.mxu0 %v3966_v59  ;;  %3377 = vmatpush3.bf16.msra.mxu1 %v3982_v10 }
 0x589   :  { %3348 = vmatprep.subr.bf16.mxu0 %v3968_v4  ;;  %3378 = vmatprep.subr.bf16.mxu1 %v3679_v53 }
 0x58a   :  { %1467 = vmatprep.mubr.f32.mxu0 %v3678_v3  ;;  %2765 = vmatprep.mubr.msk.f32.mxu1 %vm3680_vm3, %v3678_v3 }
 0x58c   :  { %3350 = vmatpush1.bf16.msra.mxu0 %v3991_v14  ;;  %3380 = vmatpush3.bf16.msra.mxu1 %v4010_v20 }
 0x58d   :  { %3352 = vmatprep.subr.bf16.mxu0 %v3995_v15  ;;  %3381 = vmatprep.subr.bf16.mxu1 %v3679_v53 }
 0x590   :  { %3354 = vmatpush1.bf16.msra.mxu0 %v4022_v23  ;;  %3383 = vmatpush3.bf16.msra.mxu1 %v4041_v29 }
 0x591   :  { %3356 = vmatprep.subr.bf16.mxu0 %v4026_v24  ;;  %3384 = vmatprep.subr.bf16.mxu1 %v3679_v53 }
 0x594   :  { %3358 = vmatpush1.bf16.msra.mxu0 %v4051_v32  ;;  %3386 = vmatpush3.bf16.msra.mxu1 %v4069_v44 }
 0x595   :  { %3360 = vmatprep.subr.bf16.mxu0 %v4054_v33  ;;  %3387 = vmatprep.subr.bf16.mxu1 %v3679_v53 }
 0x598   :  { %3362 = vmatpush1.bf16.msra.mxu0 %v4079_v48  ;;  %3389 = vmatpush3.bf16.msra.mxu1 %v4097_v55 }
 0x599   :  { %3364 = vmatprep.subr.bf16.mxu0 %v4082_v49  ;;  %3390 = vmatprep.subr.bf16.mxu1 %v3679_v53 }
 0x59c   :  { %3366 = vmatpush1.bf16.msra.mxu0 %v4107_v58  ;;  %3392 = vmatpush3.bf16.msra.mxu1 %v4125_v1 }
 0x59d   :  { %3368 = vmatprep.subr.bf16.mxu0 %v4110_v60  ;;  %3393 = vmatprep.subr.bf16.mxu1 %v3679_v53 }
 0x5a0   :  { %3370 = vmatpush1.bf16.msra.mxu0 %v4135_v37  ;;  %3395 = vmatpush3.bf16.msra.mxu1 %v4147_v47 }
 0x5a1   :  { %3372 = vmatprep.subr.bf16.mxu0 %v4138_v38  ;;  %3396 = vmatprep.subr.bf16.mxu1 %v3679_v53 }
 0x5a4   :  { %3374 = vmatpush1.bf16.msra.mxu0 %v4157_v7  ;;  %3398 = vmatpush3.bf16.msra.mxu1 %v4161_v8 }
 0x5a5   :  { %3400 = vmatprep.subr.bf16.mxu0 %v3930_v42  ;;  %3431 = vmatprep.subr.bf16.mxu1 %v3679_v53 }
 0x65a   :  { %v1291_v50 = vpop.f32.mrb[14].mxu0  ;;  %v1362_v16 = vpop.f32.mrb[12].mxu1 }
 0x65b   :  { %v1292_v62 = vadd.f32 %v1291_v50, %v4217_v41  ;;  %v1293_v18 = vpop.f32.mrb[15].mxu0  ;;  %v2732_v19 = vpop.f32.mrb[13].mxu1  ;;  %v1363_v40 = vadd.f32 %v1362_v16, %v4229_v43  ;;  %v4515_v50 = vld [vmem:[#allocation3] sm:$0xff]  ;;  %v1763_v16 = vld [vmem:[%s4741_s5] sm:$0xff] }
 0x65c   :  { %v1294_v21 = vadd.f32 %v1293_v18, %v4219_v45  ;;  %v2214_v18 = vld [vmem:[%s4741_s5 + $0x80] sm:$0xff] }
 0x65d   :  { %v1367_v22 = vrot.slane %v1292_v62, 6  ;;  %v1387_v46 = vrot.slane %v1363_v40, 6  ;;  %v1764_v62 = vld [vmem:[%s4741_s5 + $0x8] sm:$0xff] }
 0x65e   :  { %v1377_v25 = vrot.slane %v1294_v21, 6  ;;  %v3455_v19 = vpack.c.bf16 %v1764_v62, %v1763_v16  ;;  %v2215_v21 = vld [vmem:[%s4741_s5 + $0x88] sm:$0xff] }
 0x65f   :  { %v1369_v13 = vadd.f32 %v1367_v22, %v4210_v31  ;;  %v3487_v22 = vpack.c.bf16 %v2215_v21, %v2214_v18 }
 0x660   :  { %v1379_v12 = vadd.f32 %v1377_v25, %v4212_v36  ;;  %v1765_v25 = vld [vmem:[%s4741_s5 + $0x10] sm:$0xff] }
 0x661   :  { %v2207_v30 = vmul.f32 -1.442695, %v1369_v13  ;;  %v1766_v13 = vld [vmem:[%s4741_s5 + $0x18] sm:$0xff] }
 0x662   :  { %v2208_v28 = vmul.f32 -1.442695, %v1379_v12  ;;  %v2216_v12 = vld [vmem:[%s4741_s5 + $0x90] sm:$0xff] }
 0x663   :  { %3640 = vpow2.f32 %v2207_v30  ;;  %v3459_v30 = vpack.c.bf16 %v1766_v13, %v1765_v25 }
 0x664   :  { %3642 = vpow2.f32 %v2208_v28  ;;  %v2217_v28 = vld [vmem:[%s4741_s5 + $0x98] sm:$0xff] }
 0x66d   :  { %v3641_v42 = vpop.eup %3640 }
 0x66e   :  { %v3643_v17 = vpop.eup %3642  ;;  %v1373_v27 = vadd.f32 1.0, %v3641_v42  ;;  %v3491_v42 = vpack.c.bf16 %v2217_v28, %v2216_v12 }
 0x66f   :  { %v1383_v34 = vadd.f32 1.0, %v3643_v17  ;;  %v1767_v17 = vld [vmem:[%s4741_s5 + $0x20] sm:$0xff] }
 0x670   :  { %3644 = vrcp.f32 %v1373_v27  ;;  %v1768_v27 = vld [vmem:[%s4741_s5 + $0x28] sm:$0xff] }
 0x671   :  { %3646 = vrcp.f32 %v1383_v34  ;;  %v2218_v34 = vld [vmem:[%s4741_s5 + $0xa0] sm:$0xff]  ;;  %v3463_v40 = vpack.c.bf16 %v1768_v27, %v1767_v17 }
 0x67a   :  { %v3645_v51 = vpop.eup %3644 }
 0x67b   :  { %v3647_v54 = vpop.eup %3646  ;;  %v1389_v56 = vmul.f32 %v3645_v51, %v1387_v46  ;;  %v2219_v46 = vld [vmem:[%s4741_s5 + $0xa8] sm:$0xff] }
 0x67c   :  { %v1397_v57 = vmul.f32 %v3647_v54, %v1395_v52  ;;  %v1392_v63 = vsub.f32 1.0, %v3647_v54  ;;  %v3495_v51 = vpack.c.bf16 %v2219_v46, %v2218_v34  ;;  %v1769_v52 = vld [vmem:[%s4741_s5 + $0x30] sm:$0xff]  ;;  %v1770_v54 = vld [vmem:[%s4741_s5 + $0x38] sm:$0xff] }
 0x67d   :  { %v1390_v61 = vadd.f32 %v1389_v56, %v4208_v26  ;;  %v2220_v56 = vld [vmem:[%s4741_s5 + $0xb0] sm:$0xff] }
 0x67f   :  { %3648 = vtanh.f32 %v1390_v61  ;;  %v2221_v61 = vld [vmem:[%s4741_s5 + $0xb8] sm:$0xff] }
 0x689   :  { %v3649_v0 = vpop.eup %3648 }
 0x68a   :  { %v1393_v2 = vmul.f32 %v3649_v0, %v1392_v63  ;;  %v3499_v63 = vpack.c.bf16 %v2221_v61, %v2220_v56  ;;  %v1771_v0 = vld [vmem:[%s4741_s5 + $0x40] sm:$0xff]  ;;  %v2232_v61 = vld [vmem:[%s4741_s5 + $0x110] sm:$0xff] }
 0x68c   :  { %v4467_v35 = vadd.f32 %v1397_v57, %v1393_v2  ;;  %v3467_v57 = vpack.c.bf16 %v1770_v54, %v1769_v52  ;;  %v1772_v2 = vld [vmem:[%s4741_s5 + $0x48] sm:$0xff] }
 0x68e   :  { %1399 = vst [vmem:[#allocation3 + $0x8] sm:$0xc] %v4467_v35  ;;  %v1401_v39 = vrot.slane %v4467_v35, 2 }
 0x690   :  { %1468 = vmatmul.mubr.f32.vlgmr.msra.gmra.mrb[16].mxu0 %v1401_v39  ;;  %2766 = vmatmul.mubr.f32.vlgmr.msra.gmra.mrb[14].mxu1 %v1401_v39  ;;  %v3471_v39 = vpack.c.bf16 %v1772_v2, %v1771_v0  ;;  %v2235_v0 = vld [vmem:[%s4741_s5 + $0x128] sm:$0xff] }
 0x691   :  { %3402 = vmatpush1.bf16.msra.mxu0 %v3966_v59  ;;  %3433 = vmatpush3.bf16.msra.mxu1 %v3982_v10 }
 0x692   :  { %3404 = vmatprep.subr.bf16.mxu0 %v3968_v4  ;;  %3434 = vmatprep.subr.bf16.mxu1 %v3679_v53 }
 0x693   :  { %1644 = vmatprep.mubr.f32.mxu0 %v3678_v3  ;;  %2800 = vmatprep.mubr.msk.f32.mxu1 %vm3680_vm3, %v3678_v3 }
 0x695   :  { %3406 = vmatpush1.bf16.msra.mxu0 %v3991_v14  ;;  %3436 = vmatpush3.bf16.msra.mxu1 %v4010_v20 }
 0x696   :  { %3408 = vmatprep.subr.bf16.mxu0 %v3995_v15  ;;  %3437 = vmatprep.subr.bf16.mxu1 %v3679_v53 }
 0x699   :  { %3410 = vmatpush1.bf16.msra.mxu0 %v4022_v23  ;;  %3439 = vmatpush3.bf16.msra.mxu1 %v4041_v29 }
 0x69a   :  { %3412 = vmatprep.subr.bf16.mxu0 %v4026_v24  ;;  %3440 = vmatprep.subr.bf16.mxu1 %v3679_v53 }
 0x69d   :  { %3414 = vmatpush1.bf16.msra.mxu0 %v4051_v32  ;;  %3442 = vmatpush3.bf16.msra.mxu1 %v4069_v44 }
 0x69e   :  { %3416 = vmatprep.subr.bf16.mxu0 %v4054_v33  ;;  %3443 = vmatprep.subr.bf16.mxu1 %v3679_v53 }
 0x6a1   :  { %3418 = vmatpush1.bf16.msra.mxu0 %v4079_v48  ;;  %3445 = vmatpush3.bf16.msra.mxu1 %v4097_v55 }
 0x6a2   :  { %3420 = vmatprep.subr.bf16.mxu0 %v4082_v49  ;;  %3446 = vmatprep.subr.bf16.mxu1 %v3679_v53 }
 0x6a5   :  { %3422 = vmatpush1.bf16.msra.mxu0 %v4107_v58  ;;  %3448 = vmatpush3.bf16.msra.mxu1 %v4125_v1  ;;  %v1572_v1 = vrot.slane %v4467_v35, 6  ;;  %v2222_v35 = vld [vmem:[%s4741_s5 + $0xc0] sm:$0xff] }
 0x6a6   :  { %3424 = vmatprep.subr.bf16.mxu0 %v4110_v60  ;;  %3449 = vmatprep.subr.bf16.mxu1 %v3679_v53 }
 0x6a9   :  { %3426 = vmatpush1.bf16.msra.mxu0 %v4135_v37  ;;  %3451 = vmatpush3.bf16.msra.mxu1 %v4147_v47 }
 0x6aa   :  { %3428 = vmatprep.subr.bf16.mxu0 %v4138_v38  ;;  %3452 = vmatprep.subr.bf16.mxu1 %v3679_v53 }
 0x6ad   :  { %3430 = vmatpush1.bf16.msra.mxu0 %v4157_v7  ;;  %3454 = vmatpush3.bf16.msra.mxu1 %v4161_v8 }
 0x6ae   :  { %3456 = vmatprep.subr.bf16.mxu0 %v3455_v19  ;;  %3488 = vmatprep.subr.bf16.mxu1 %v3487_v22 }
 0x763   :  { %v1469_v3 = vpop.f32.mrb[16].mxu0  ;;  %v1540_v59 = vpop.f32.mrb[14].mxu1 }
 0x764   :  { %v1470_v4 = vadd.f32 %v1469_v3, %v4217_v41  ;;  %v1471_v10 = vpop.f32.mrb[17].mxu0  ;;  %v2767_v14 = vpop.f32.mrb[15].mxu1  ;;  %v1541_v55 = vadd.f32 %v1540_v59, %v4229_v43  ;;  %v2223_v3 = vld [vmem:[%s4741_s5 + $0xc8] sm:$0xff] }
 0x765   :  { %v1472_v15 = vadd.f32 %v1471_v10, %v4219_v45  ;;  %v3503_v59 = vpack.c.bf16 %v2223_v3, %v2222_v35  ;;  %v1774_v10 = vld [vmem:[%s4741_s5 + $0x58] sm:$0xff]  ;;  %v2224_v14 = vld [vmem:[%s4741_s5 + $0xd0] sm:$0xff]  ;;  %v2250_v3 = vld [vmem:[%s4741_s5 + $0x1a0] sm:$0xff] }
 0x766   :  { %v1545_v20 = vrot.slane %v1470_v4, 4  ;;  %v1565_v58 = vrot.slane %v1541_v55, 4  ;;  %v1773_v4 = vld [vmem:[%s4741_s5 + $0x50] sm:$0xff] }
 0x767   :  { %v1555_v23 = vrot.slane %v1472_v15, 4  ;;  %v3475_v15 = vpack.c.bf16 %v1774_v10, %v1773_v4  ;;  %v2228_v55 = vld [vmem:[%s4741_s5 + $0xf0] sm:$0xff] }
 0x768   :  { %v1547_v24 = vadd.f32 %v1545_v20, %v4210_v31  ;;  %v2225_v20 = vld [vmem:[%s4741_s5 + $0xd8] sm:$0xff] }
 0x769   :  { %v1557_v29 = vadd.f32 %v1555_v23, %v4212_v36  ;;  %v3507_v23 = vpack.c.bf16 %v2225_v20, %v2224_v14  ;;  %v2236_v14 = vld [vmem:[%s4741_s5 + $0x130] sm:$0xff] }
 0x76a   :  { %v2209_v32 = vmul.f32 -1.442695, %v1547_v24  ;;  %v1775_v24 = vld [vmem:[%s4741_s5 + $0x60] sm:$0xff]  ;;  %v2252_v20 = vld [vmem:[%s4741_s5 + $0x1b0] sm:$0xff] }
 0x76b   :  { %v2210_v53 = vmul.f32 -1.442695, %v1557_v29  ;;  %v1776_v29 = vld [vmem:[%s4741_s5 + $0x68] sm:$0xff] }
 0x76c   :  { %3650 = vpow2.f32 %v2209_v32  ;;  %v2226_v32 = vld [vmem:[%s4741_s5 + $0xe0] sm:$0xff] }
 0x76d   :  { %3652 = vpow2.f32 %v2210_v53  ;;  %v3479_v53 = vpack.c.bf16 %v1776_v29, %v1775_v24  ;;  %v2238_v29 = vld [vmem:[%s4741_s5 + $0x140] sm:$0xff] }
 0x776   :  { %v3651_v33 = vpop.eup %3650 }
 0x777   :  { %v3653_v44 = vpop.eup %3652  ;;  %v1551_v48 = vadd.f32 1.0, %v3651_v33  ;;  %v2227_v33 = vld [vmem:[%s4741_s5 + $0xe8] sm:$0xff] }
 0x778   :  { %v1561_v49 = vadd.f32 1.0, %v3653_v44  ;;  %v3511_v44 = vpack.c.bf16 %v2227_v33, %v2226_v32  ;;  %v2239_v32 = vld [vmem:[%s4741_s5 + $0x148] sm:$0xff] }
 0x779   :  { %3654 = vrcp.f32 %v1551_v48  ;;  %v1777_v48 = vld [vmem:[%s4741_s5 + $0x70] sm:$0xff]  ;;  %v2255_v33 = vld [vmem:[%s4741_s5 + $0x1c8] sm:$0xff] }
 0x77a   :  { %3656 = vrcp.f32 %v1561_v49  ;;  %v1778_v49 = vld [vmem:[%s4741_s5 + $0x78] sm:$0xff] }
 0x783   :  { %v3655_v60 = vpop.eup %3654 }
 0x784   :  { %v3657_v37 = vpop.eup %3656  ;;  %v1567_v38 = vmul.f32 %v3655_v60, %v1565_v58  ;;  %v3483_v58 = vpack.c.bf16 %v1778_v49, %v1777_v48  ;;  %v2229_v60 = vld [vmem:[%s4741_s5 + $0xf8] sm:$0xff]  ;;  %v2240_v49 = vld [vmem:[%s4741_s5 + $0x150] sm:$0xff] }
 0x785   :  { %v1574_v47 = vmul.f32 %v3657_v37, %v1572_v1  ;;  %v1570_v8 = vsub.f32 1.0, %v3657_v37  ;;  %v2230_v1 = vld [vmem:[%s4741_s5 + $0x100] sm:$0xff]  ;;  %v2231_v37 = vld [vmem:[%s4741_s5 + $0x108] sm:$0xff] }
 0x786   :  { %v1568_v7 = vadd.f32 %v1567_v38, %v4208_v26  ;;  %v3515_v38 = vpack.c.bf16 %v2229_v60, %v2228_v55  ;;  %v2241_v55 = vld [vmem:[%s4741_s5 + $0x158] sm:$0xff] }
 0x787   :  { %v2257_v60 = vld [vmem:[%s4741_s5 + $0x1d8] sm:$0xff] }
 0x788   :  { %3658 = vtanh.f32 %v1568_v7  ;;  %v2246_v7 = vld [vmem:[%s4741_s5 + $0x180] sm:$0xff] }
 0x792   :  { %v3659_v5 = vpop.eup %3658 }
 0x793   :  { %v1571_v6 = vmul.f32 %v3659_v5, %v1570_v8  ;;  %v2247_v8 = vld [vmem:[%s4741_s5 + $0x188] sm:$0xff] }
 0x794   :  { %v3551_v5 = vpack.c.bf16 %v2247_v8, %v2246_v7  ;;  %v2258_v7 = vld [vmem:[%s4741_s5 + $0x1e0] sm:$0xff]  ;;  %v2259_v8 = vld [vmem:[%s4741_s5 + $0x1e8] sm:$0xff] }
 0x795   :  { %v4511_v9 = vadd.f32 %v1574_v47, %v1571_v6  ;;  %v3519_v47 = vpack.c.bf16 %v2231_v37, %v2230_v1  ;;  %v3539_v1 = vpack.c.bf16 %v2241_v55, %v2240_v49 }
 0x797   :  { %1576 = vst [vmem:[#allocation3 + $0x8] sm:$0x30] %v4511_v9  ;;  %v1578_v11 = vrot.slane %v4511_v9, 4 }
 0x799   :  { %1645 = vmatmul.mubr.f32.vlgmr.msra.gmra.mrb[18].mxu0 %v1578_v11  ;;  %2801 = vmatmul.mubr.f32.vlgmr.msra.gmra.mrb[16].mxu1 %v1578_v11 }
 0x79a   :  { %2835 = vmatprep.mubr.f32.mxu0 %v4515_v50  ;;  %2870 = vmatprep.mubr.f32.mxu1 %v4515_v50 }
 0x79b   :  { %3458 = vmatpush3.bf16.msra.mxu0 %v3455_v19  ;;  %3490 = vmatpush3.bf16.msra.mxu1 %v3487_v22 }
 0x79c   :  { %3460 = vmatprep.subr.bf16.mxu0 %v3459_v30  ;;  %3492 = vmatprep.subr.bf16.mxu1 %v3491_v42 }
 0x79f   :  { %3462 = vmatpush3.bf16.msra.mxu0 %v3459_v30  ;;  %3494 = vmatpush3.bf16.msra.mxu1 %v3491_v42 }
 0x7a0   :  { %3464 = vmatprep.subr.bf16.mxu0 %v3463_v40  ;;  %3496 = vmatprep.subr.bf16.mxu1 %v3495_v51 }
 0x7a3   :  { %3466 = vmatpush3.bf16.msra.mxu0 %v3463_v40  ;;  %3498 = vmatpush3.bf16.msra.mxu1 %v3495_v51  ;;  %v1749_v40 = vrot.slane %v4511_v9, 6  ;;  %v2248_v9 = vld [vmem:[%s4741_s5 + $0x190] sm:$0xff] }
 0x7a4   :  { %3468 = vmatprep.subr.bf16.mxu0 %v3467_v57  ;;  %3500 = vmatprep.subr.bf16.mxu1 %v3499_v63 }
 0x7a7   :  { %3470 = vmatpush3.bf16.msra.mxu0 %v3467_v57  ;;  %3502 = vmatpush3.bf16.msra.mxu1 %v3499_v63  ;;  %v2234_v63 = vld [vmem:[%s4741_s5 + $0x120] sm:$0xff] }
 0x7a8   :  { %3472 = vmatprep.subr.bf16.mxu0 %v3471_v39  ;;  %3504 = vmatprep.subr.bf16.mxu1 %v3503_v59  ;;  %v3527_v4 = vpack.c.bf16 %v2235_v0, %v2234_v63 }
 0x7ab   :  { %3474 = vmatpush3.bf16.msra.mxu0 %v3471_v39  ;;  %3506 = vmatpush3.bf16.msra.mxu1 %v3503_v59  ;;  %v2251_v59 = vld [vmem:[%s4741_s5 + $0x1a8] sm:$0xff] }
 0x7ac   :  { %3476 = vmatprep.subr.bf16.mxu0 %v3475_v15  ;;  %3508 = vmatprep.subr.bf16.mxu1 %v3507_v23  ;;  %v3559_v10 = vpack.c.bf16 %v2251_v59, %v2250_v3 }
 0x7af   :  { %3478 = vmatpush3.bf16.msra.mxu0 %v3475_v15  ;;  %3510 = vmatpush3.bf16.msra.mxu1 %v3507_v23  ;;  %v2237_v15 = vld [vmem:[%s4741_s5 + $0x138] sm:$0xff] }
 0x7b0   :  { %3480 = vmatprep.subr.bf16.mxu0 %v3479_v53  ;;  %3512 = vmatprep.subr.bf16.mxu1 %v3511_v44  ;;  %v3531_v23 = vpack.c.bf16 %v2237_v15, %v2236_v14 }
 0x7b3   :  { %3482 = vmatpush3.bf16.msra.mxu0 %v3479_v53  ;;  %3514 = vmatpush3.bf16.msra.mxu1 %v3511_v44  ;;  %v2254_v53 = vld [vmem:[%s4741_s5 + $0x1c0] sm:$0xff]  ;;  %v3535_v44 = vpack.c.bf16 %v2239_v32, %v2238_v29 }
 0x7b4   :  { %3484 = vmatprep.subr.bf16.mxu0 %v3483_v58  ;;  %3516 = vmatprep.subr.bf16.mxu1 %v3515_v38  ;;  %v3567_v48 = vpack.c.bf16 %v2255_v33, %v2254_v53 }
 0x7b7   :  { %3486 = vmatpush3.bf16.msra.mxu0 %v3483_v58  ;;  %3518 = vmatpush3.bf16.msra.mxu1 %v3515_v38  ;;  %v2256_v58 = vld [vmem:[%s4741_s5 + $0x1d0] sm:$0xff]  ;;  %v2242_v38 = vld [vmem:[%s4741_s5 + $0x160] sm:$0xff] }
 0x7b8   :  { %3520 = vmatprep.subr.bf16.mxu0 %v3519_v47  ;;  %3552 = vmatprep.subr.bf16.mxu1 %v3551_v5  ;;  %v3571_v37 = vpack.c.bf16 %v2257_v60, %v2256_v58 }
 0x86c   :  { %v1646_v6 = vpop.f32.mrb[18].mxu0  ;;  %v1717_v11 = vpop.f32.mrb[16].mxu1 }
 0x86d   :  { %v1647_v16 = vadd.f32 %v1646_v6, %v4217_v41  ;;  %v1648_v62 = vpop.f32.mrb[19].mxu0  ;;  %v2802_v18 = vpop.f32.mrb[17].mxu1  ;;  %v1718_v41 = vadd.f32 %v1717_v11, %v4229_v43  ;;  %v2233_v43 = vld [vmem:[%s4741_s5 + $0x118] sm:$0xff]  ;;  %v3575_v6 = vpack.c.bf16 %v2259_v8, %v2258_v7  ;;  %v2244_v11 = vld [vmem:[%s4741_s5 + $0x170] sm:$0xff] }
 0x86e   :  { %v1649_v19 = vadd.f32 %v1648_v62, %v4219_v45  ;;  %v3523_v35 = vpack.c.bf16 %v2233_v43, %v2232_v61  ;;  %v2260_v62 = vld [vmem:[%s4741_s5 + $0x1f0] sm:$0xff]  ;;  %v2261_v18 = vld [vmem:[%s4741_s5 + $0x1f8] sm:$0xff] }
 0x86f   :  { %v1722_v21 = vrot.slane %v1647_v16, 2  ;;  %v1742_v34 = vrot.slane %v1718_v41, 2  ;;  %v2245_v16 = vld [vmem:[%s4741_s5 + $0x178] sm:$0xff] }
 0x870   :  { %v1732_v22 = vrot.slane %v1649_v19, 2  ;;  %v3547_v19 = vpack.c.bf16 %v2245_v16, %v2244_v11 }
 0x871   :  { %v1724_v25 = vadd.f32 %v1722_v21, %v4210_v31  ;;  %v3579_v21 = vpack.c.bf16 %v2261_v18, %v2260_v62 }
 0x872   :  { %v1734_v13 = vadd.f32 %v1732_v22, %v4212_v36  ;;  %v2213_v22 = vld [vmem:[%s4742_s6] ss:$0 sm:$0xff] }
 0x873   :  { %v2211_v12 = vmul.f32 -1.442695, %v1724_v25 }
 0x874   :  { %v2212_v30 = vmul.f32 -1.442695, %v1734_v13 }
 0x875   :  { %3660 = vpow2.f32 %v2211_v12 }
 0x876   :  { %3662 = vpow2.f32 %v2212_v30 }
 0x87f   :  { %v3661_v28 = vpop.eup %3660 }
 0x880   :  { %v3663_v42 = vpop.eup %3662  ;;  %v1728_v17 = vadd.f32 1.0, %v3661_v28 }
 0x881   :  { %v1738_v27 = vadd.f32 1.0, %v3663_v42 }
 0x882   :  { %3664 = vrcp.f32 %v1728_v17 }
 0x883   :  { %3666 = vrcp.f32 %v1738_v27 }
 0x88c   :  { %v3665_v45 = vpop.eup %3664 }
 0x88d   :  { %v3667_v46 = vpop.eup %3666  ;;  %v1744_v31 = vmul.f32 %v3665_v45, %v1742_v34 }
 0x88e   :  { %v1751_v51 = vmul.f32 %v3667_v46, %v1749_v40  ;;  %v1747_v52 = vsub.f32 1.0, %v3667_v46 }
 0x88f   :  { %v1745_v36 = vadd.f32 %v1744_v31, %v4208_v26  ;;  %v2249_v26 = vld [vmem:[%s4741_s5 + $0x198] sm:$0xff] }
 0x890   :  { %v3555_v39 = vpack.c.bf16 %v2249_v26, %v2248_v9 }
 0x891   :  { %3668 = vtanh.f32 %v1745_v36 }
 0x89b   :  { %v3669_v54 = vpop.eup %3668 }
 0x89c   :  { %v1748_v56 = vmul.f32 %v3669_v54, %v1747_v52 }
 0x89e   :  { %v1752_v57 = vadd.f32 %v1751_v51, %v1748_v56 }
 0x8a0   :  { %1753 = vst [vmem:[#allocation3 + $0x8] sm:$0xc0] %v1752_v57 }
 0x8a7   :  { %v4652_v2 = vld [vmem:[#allocation3 + $0x8] sm:$0xff] }
 0x8a8   :  { %2836 = vmatmul.mubr.f32.vlgmr.msra.gmra.mrb[20].mxu0 %v4652_v2  ;;  %2871 = vmatmul.mubr.f32.vlgmr.msra.gmra.mrb[18].mxu1 %v4652_v2 }
 0x8a9   :  { %3522 = vmatpush3.bf16.msra.mxu0 %v3519_v47  ;;  %3554 = vmatpush3.bf16.msra.mxu1 %v3551_v5  ;;  %v2243_v47 = vld [vmem:[%s4741_s5 + $0x168] sm:$0xff] }
 0x8aa   :  { %2905 = vmatprep.mubr.f32.mxu0 %v4515_v50  ;;  %2940 = vmatprep.mubr.f32.mxu1 %v4515_v50  ;;  %v2253_v50 = vld [vmem:[%s4741_s5 + $0x1b8] sm:$0xff]  ;;  %v3543_v5 = vpack.c.bf16 %v2243_v47, %v2242_v38 }
 0x8ab   :  { %3524 = vmatprep.subr.bf16.mxu0 %v3523_v35  ;;  %3556 = vmatprep.subr.bf16.mxu1 %v3555_v39  ;;  %v3563_v24 = vpack.c.bf16 %v2253_v50, %v2252_v20 }
 0x8ad   :  { %3526 = vmatpush3.bf16.msra.mxu0 %v3523_v35  ;;  %3558 = vmatpush3.bf16.msra.mxu1 %v3555_v39 }
 0x8ae   :  { %3528 = vmatprep.subr.bf16.mxu0 %v3527_v4  ;;  %3560 = vmatprep.subr.bf16.mxu1 %v3559_v10 }
 0x8b1   :  { %3530 = vmatpush3.bf16.msra.mxu0 %v3527_v4  ;;  %3562 = vmatpush3.bf16.msra.mxu1 %v3559_v10 }
 0x8b2   :  { %3532 = vmatprep.subr.bf16.mxu0 %v3531_v23  ;;  %3564 = vmatprep.subr.bf16.mxu1 %v3563_v24 }
 0x8b5   :  { %3534 = vmatpush3.bf16.msra.mxu0 %v3531_v23  ;;  %3566 = vmatpush3.bf16.msra.mxu1 %v3563_v24 }
 0x8b6   :  { %3536 = vmatprep.subr.bf16.mxu0 %v3535_v44  ;;  %3568 = vmatprep.subr.bf16.mxu1 %v3567_v48 }
 0x8b9   :  { %3538 = vmatpush3.bf16.msra.mxu0 %v3535_v44  ;;  %3570 = vmatpush3.bf16.msra.mxu1 %v3567_v48 }
 0x8ba   :  { %3540 = vmatprep.subr.bf16.mxu0 %v3539_v1  ;;  %3572 = vmatprep.subr.bf16.mxu1 %v3571_v37 }
 0x8bd   :  { %3542 = vmatpush3.bf16.msra.mxu0 %v3539_v1  ;;  %3574 = vmatpush3.bf16.msra.mxu1 %v3571_v37 }
 0x8be   :  { %3544 = vmatprep.subr.bf16.mxu0 %v3543_v5  ;;  %3576 = vmatprep.subr.bf16.mxu1 %v3575_v6 }
 0x8c1   :  { %3546 = vmatpush3.bf16.msra.mxu0 %v3543_v5  ;;  %3578 = vmatpush3.bf16.msra.mxu1 %v3575_v6 }
 0x8c2   :  { %3548 = vmatprep.subr.bf16.mxu0 %v3547_v19  ;;  %3580 = vmatprep.subr.bf16.mxu1 %v3579_v21 }
 0x8c5   :  { %3550 = vmatpush3.bf16.msra.mxu0 %v3547_v19  ;;  %3582 = vmatpush3.bf16.msra.mxu1 %v3579_v21 }
 0x8c8   :  { %2906 = vmatmul.mubr.f32.vlgmr.msra.gmra.mrb[22].mxu0 %v4652_v2  ;;  %2941 = vmatmul.mubr.f32.vlgmr.msra.gmra.mrb[20].mxu1 %v4652_v2 }
 0x97b   :  { %v2837_v25 = vpop.f32.mrb[20].mxu0  ;;  %v2872_v13 = vpop.f32.mrb[18].mxu1 }
 0x97c   :  { %v1855_v12 = vadd.f32 %v2837_v25, %v2213_v22  ;;  %v1952_v30 = vrot.slane %v2872_v13, 2  ;;  %v1845_v28 = vpop.f32.mrb[21].mxu0  ;;  %v1939_v42 = vpop.f32.mrb[19].mxu1 }
 0x97d   :  { %v1854_v17 = vadd.f32 %v2213_v22, %v1845_v28  ;;  %v1951_v27 = vrot.slane %v1939_v42, 2 }
 0x97e   :  { %v1957_v41 = vadd.f32 %v1952_v30, %v1855_v12 }
 0x97f   :  { %v1953_v34 = vsel %vm1950_vm4, %v1951_v27, %v1952_v30 }
 0x980   :  { %v1956_v45 = vadd.f32 %v1953_v34, %v1854_v17 }
 0x99b   :  { %v2907_v40 = vpop.f32.mrb[22].mxu0  ;;  %v2942_v46 = vpop.f32.mrb[20].mxu1 }
 0x99c   :  { %v2054_v31 = vrot.slane %v2907_v40, 4  ;;  %v2155_v51 = vrot.slane %v2942_v46, 6  ;;  %v2041_v36 = vpop.f32.mrb[23].mxu0  ;;  %v2143_v52 = vpop.f32.mrb[21].mxu1 }
 0x99d   :  { %v2053_v54 = vrot.slane %v2041_v36, 4  ;;  %v2154_v56 = vrot.slane %v2143_v52, 6 }
 0x99e   :  { %v2059_v57 = vadd.f32 %v2054_v31, %v1957_v41 }
 0x99f   :  { %v2055_v61 = vsel %vm2052_vm5, %v2053_v54, %v2054_v31  ;;  %v2156_v43 = vsel %vm42_vm0, %v2154_v56, %v2155_v51 }
 0x9a0   :  { %v2160_v9 = vadd.f32 %v2155_v51, %v2059_v57  ;;  %v2058_v26 = vadd.f32 %v2055_v61, %v1956_v45 }
 0x9a2   :  { %v2164_v63 = vmin.f32 %v2160_v9, 20.0  ;;  %v2159_v0 = vadd.f32 %v2156_v43, %v2058_v26  ;;  %vm2162_vm8 = vcmp.gt.f32.partialorder %v2160_v9, 20.0 }
 0x9a4   :  { %v2167_v2 = vmul.f32 1.442695, %v2164_v63  ;;  %v2163_v35 = vmin.f32 %v2159_v0, 20.0  ;;  %vm2161_vm11 = vcmp.gt.f32.partialorder %v2159_v0, 20.0 }
 0x9a6   :  { %3670 = vpow2.f32 %v2167_v2  ;;  %v2165_v39 = vmul.f32 1.442695, %v2163_v35 }
 0x9a8   :  { %3672 = vpow2.f32 %v2165_v39 }
 0x9b0   :  { %v3671_v3 = vpop.eup %3670 }
 0x9b1   :  { %v2178_v59 = vadd.f32 1.0, %v3671_v3  ;;  %v2181_v14 = vmul.f32 -0.5, %v3671_v3  ;;  %v2184_v50 = vand.u32 2147483647, %v3671_v3 }
 0x9b2   :  { %v3673_v4 = vpop.eup %3672 }
 0x9b3   :  { %3674 = vlog2.f32 %v2178_v59  ;;  %v2169_v10 = vadd.f32 1.0, %v3673_v4  ;;  %v2172_v15 = vmul.f32 -0.5, %v3673_v4  ;;  %v2182_v20 = vadd.f32 1.0, %v2181_v14 }
 0x9b4   :  { %v2175_v29 = vand.u32 2147483647, %v3673_v4  ;;  %vm2185_vm6 = vcmp.lt.f32.partialorder %v2184_v50, 0.0004427343 }
 0x9b5   :  { %3676 = vlog2.f32 %v2169_v10  ;;  %v2173_v23 = vadd.f32 1.0, %v2172_v15  ;;  %v2183_v53 = vmul.f32 %v3671_v3, %v2182_v20 }
 0x9b6   :  { %vm2176_vm9 = vcmp.lt.f32.partialorder %v2175_v29, 0.0004427343 }
 0x9b7   :  { %v2174_v49 = vmul.f32 %v3673_v4, %v2173_v23 }
 0x9bd   :  { %v3675_v24 = vpop.eup %3674 }
 0x9be   :  { %v2180_v32 = vmul.f32 0.6931472, %v3675_v24 }
 0x9bf   :  { %v3677_v33 = vpop.eup %3676 }
 0x9c0   :  { %v2186_v44 = vsel %vm2185_vm6, %v2183_v53, %v2180_v32  ;;  %v2171_v48 = vmul.f32 0.6931472, %v3677_v33 }
 0x9c1   :  { %v2188_v55 = vsel %vm2162_vm8, %v2160_v9, %v2186_v44 }
 0x9c2   :  { %2192 = vst.msk [vmem:[%s4743_s7 + $0x8] sm:$0x3] %vm2191_vm7, %v2188_v55  ;;  %v2177_v58 = vsel %vm2176_vm9, %v2174_v49, %v2171_v48 }
 0x9c3   :  { %v2187_v60 = vsel %vm2161_vm11, %v2159_v0, %v2177_v58 }
 0x9c4   :  { %2190 = vst.msk [vmem:[%s4743_s7] sm:$0xff] %vm2189_vm10, %v2187_v60 }

</bundles_post_ra>
